<compile_context>
chip_gen: v7x
topology: tpu7x:2x2x1
jax: 0.10.0
libtpu: 0.0.40
codegen_flags: <defaults>
</compile_context>

<pallas_src>
import functools

import jax
import jax.numpy as jnp
from jax import lax
from jax.experimental import pallas as pl
from jax.experimental.pallas import tpu as pltpu


# -------------------------------- the kernel -------------------------------

def _inception_kernel(x_ref, wpw_ref, bpw_ref, wh_ref, bh_ref, wv_ref, bv_ref,
                      o_ref, *, nf, H, W):
    S = H * W
    x = x_ref[0]                                  # (Cin, S), spatial on lanes

    # ---- boundary masks for the rolled (shifted) taps ----------------------
    f = lax.broadcasted_iota(jnp.int32, (1, S), 1)          # flat index h*W+w
    w_idx = f % W
    m_w_prev = (w_idx != 0).astype(jnp.float32)              # x[h, w-1] valid
    m_w_next = (w_idx != (W - 1)).astype(jnp.float32)        # x[h, w+1] valid
    m_h_prev = (f >= W).astype(jnp.float32)                  # x[h-1, w] valid
    m_h_next = (f < (S - W)).astype(jnp.float32)             # x[h+1, w] valid

    # ---- fused pointwise (1x1) convs of all four branches ------------------
    # (4*nf, Cin) @ (Cin, S) + (4*nf, 1) -> (4*nf, S)
    y_all = jnp.dot(wpw_ref[...], x, preferred_element_type=jnp.float32)
    y_all = y_all + bpw_ref[...]

    # branch 1x1 goes straight to the output (lane-dense store)
    o_ref[0, 0:nf, :] = y_all[0:nf, :].astype(o_ref.dtype)

    def sep_conv(y, w_ref, b_ref, j, shift, m_prev, m_next):
        """3-tap conv along one spatial axis as a single K=3*nf matmul."""
        prev = pltpu.roll(y, shift=shift, axis=1) * m_prev       # x[.. - 1]
        nxt = pltpu.roll(y, shift=S - shift, axis=1) * m_next    # x[.. + 1]
        stacked = jnp.concatenate([prev, y, nxt], axis=0)        # (3*nf, S)
        out = jnp.dot(w_ref[j], stacked, preferred_element_type=jnp.float32)
        return out + b_ref[j]

    # separable branches: 1x1 result, then reps x [(1,3) conv, (3,1) conv]
    conv_idx = 0
    for b, reps in ((1, 1), (2, 2), (3, 3)):
        y = y_all[b * nf:(b + 1) * nf, :]
        for _ in range(reps):
            y = sep_conv(y, wh_ref, bh_ref, conv_idx, 1, m_w_prev, m_w_next)
            y = sep_conv(y, wv_ref, bv_ref, conv_idx, W, m_h_prev, m_h_next)
            conv_idx += 1
        # write each branch as soon as it is done (short live ranges)
        o_ref[0, b * nf:(b + 1) * nf, :] = y.astype(o_ref.dtype)


# ------------------------------- parameters ---------------------------------

def init_params(key, in_channel, out_channel, max_filter_size=7):
    assert max_filter_size % 2 == 1 and max_filter_size < 8
    n_branch = (max_filter_size + 1) // 2
    assert out_channel % n_branch == 0
    nf = out_channel // n_branch

    keys = iter(jax.random.split(key, 32))
    scale = 0.2

    def rnd(shape):
        return jax.random.normal(next(keys), shape, jnp.float32) * scale

    params = {
        "nf": nf,
        "w1": rnd((in_channel, nf)),          # 1x1 conv weight (Ci, Co)
        "b1": rnd((1, 1, 1, nf)),
    }
    # branches 3/5/7: pointwise conv, then `reps` pairs of (1x3, 3x1) convs
    for name, reps in (("3", 1), ("5", 2), ("7", 3)):
        params[f"p{name}w"] = rnd((in_channel, nf))
        params[f"p{name}b"] = rnd((1, 1, 1, nf))
        params[f"h{name}w"] = rnd((reps, 3, nf, nf))      # (tap, Ci, Co)
        params[f"h{name}b"] = rnd((reps, 1, 1, 1, nf))
        params[f"v{name}w"] = rnd((reps, 3, nf, nf))
        params[f"v{name}b"] = rnd((reps, 1, 1, 1, nf))
    return params


def _pack_params(params):
    """Consolidate the 21 tiny tensors into 6 kernel-friendly arrays."""
    nf = params["nf"]

    # fused pointwise conv over all 4 branches: (4*nf, Cin), (4*nf, 1)
    wpw = jnp.concatenate([params["w1"].T, params["p3w"].T,
                           params["p5w"].T, params["p7w"].T], axis=0)
    bpw = jnp.concatenate([params["b1"].reshape(nf, 1),
                           params["p3b"].reshape(nf, 1),
                           params["p5b"].reshape(nf, 1),
                           params["p7b"].reshape(nf, 1)], axis=0)

    def pack_taps(w3):  # (3, Ci, Co) -> (Co, 3*Ci); row r = tap*nf + ci
        return jnp.transpose(w3, (2, 0, 1)).reshape(w3.shape[2],
                                                    3 * w3.shape[1])

    wh, bh, wv, bv = [], [], [], []
    for name, reps in (("3", 1), ("5", 2), ("7", 3)):
        for i in range(reps):
            wh.append(pack_taps(params[f"h{name}w"][i]))
            bh.append(params[f"h{name}b"][i].reshape(nf, 1))
            wv.append(pack_taps(params[f"v{name}w"][i]))
            bv.append(params[f"v{name}b"][i].reshape(nf, 1))
    return (wpw, bpw, jnp.stack(wh), jnp.stack(bh),
            jnp.stack(wv), jnp.stack(bv))


# --------------------------------- wrapper -----------------------------------

def adapted_inception_forward(x_nchw, params):
    nf = params["nf"]
    n, cin, h, w = x_nchw.shape
    s = h * w
    x = x_nchw.reshape(n, cin, s).astype(jnp.float32)   # spatial -> lanes

    wpw, bpw, wh, bh, wv, bv = _pack_params(params)

    kernel = functools.partial(_inception_kernel, nf=nf, H=h, W=w)

    in_specs = [
        pl.BlockSpec((1, cin, s), lambda i: (i, 0, 0)),       # per-image input
        pl.BlockSpec(wpw.shape, lambda i: (0, 0)),            # resident weights
        pl.BlockSpec(bpw.shape, lambda i: (0, 0)),
        pl.BlockSpec(wh.shape, lambda i: (0, 0, 0)),
        pl.BlockSpec(bh.shape, lambda i: (0, 0, 0)),
        pl.BlockSpec(wv.shape, lambda i: (0, 0, 0)),
        pl.BlockSpec(bv.shape, lambda i: (0, 0, 0)),
    ]
    out_specs = pl.BlockSpec((1, 4 * nf, s), lambda i: (i, 0, 0))

    y = pl.pallas_call(
        kernel,
        grid=(n,),
        in_specs=in_specs,
        out_specs=out_specs,
        out_shape=jax.ShapeDtypeStruct((n, 4 * nf, s), jnp.float32),
        compiler_params=pltpu.CompilerParams(
            dimension_semantics=("parallel",)),
    )(x, wpw, bpw, wh, bh, wv, bv)

    return y.reshape(n, 4 * nf, h, w)                     # already NCHW order


# ---------------------- pure-JAX reference (for checking) -------------------

def _ref_forward(x_nchw, params):
    x = jnp.transpose(x_nchw, (0, 2, 3, 1)).astype(jnp.float32)
    dn = ("NHWC", "HWIO", "NHWC")

    def c1x1(inp, w, b):
        return lax.conv_general_dilated(inp, w[None, None], (1, 1), "VALID",
                                        dimension_numbers=dn) + b

    def c1x3(inp, w3, b):
        return lax.conv_general_dilated(inp, w3[None], (1, 1),
                                        ((0, 0), (1, 1)),
                                        dimension_numbers=dn) + b

    def c3x1(inp, w3, b):
        return lax.conv_general_dilated(inp, w3[:, None], (1, 1),
                                        ((1, 1), (0, 0)),
                                        dimension_numbers=dn) + b

    feats = [c1x1(x, params["w1"], params["b1"])]
    for name, reps in (("3", 1), ("5", 2), ("7", 3)):
        y = c1x1(x, params[f"p{name}w"], params[f"p{name}b"])
        for i in range(reps):
            y = c1x3(y, params[f"h{name}w"][i], params[f"h{name}b"][i])
            y = c3x1(y, params[f"v{name}w"][i], params[f"v{name}b"][i])
        feats.append(y)
    out = jnp.concatenate(feats, axis=-1)
    return jnp.transpose(out, (0, 3, 1, 2))


# ---------------------------------- main -------------------------------------

if __name__ == "__main__":
    key = jax.random.PRNGKey(0)
    kx, kp = jax.random.split(key)

    N, Cin, H, W = 2, 4, 16, 16
    out_channel = 16            # 4 branches -> nf_branch = 4
    x = jax.random.normal(kx, (N, Cin, H, W), jnp.float32)
    params = init_params(kp, Cin, out_channel, max_filter_size=7)

    y = adapted_inception_forward(x, params)
    y = jax.block_until_ready(y)

    y_ref = _ref_forward(x, params)
    assert y.shape == (N, out_channel, H, W), y.shape
    assert jnp.allclose(y, y_ref, atol=1e-4, rtol=1e-4), \
        float(jnp.max(jnp.abs(y - y_ref)))

    print("KERNEL_OK")
</pallas_src>

<mosaic_0001>
module attributes {stable_mosaic.version = 11 : i64} {
  func.func @_inception_kernel(%arg0: i32, %arg1: memref<1x4x256xf32, #tpu.memory_space<vmem>>, %arg2: memref<16x4xf32, #tpu.memory_space<vmem>>, %arg3: memref<16x1xf32, #tpu.memory_space<vmem>>, %arg4: memref<6x4x12xf32, #tpu.memory_space<vmem>>, %arg5: memref<6x4x1xf32, #tpu.memory_space<vmem>>, %arg6: memref<6x4x12xf32, #tpu.memory_space<vmem>>, %arg7: memref<6x4x1xf32, #tpu.memory_space<vmem>>, %arg8: memref<1x16x256xf32, #tpu.memory_space<vmem>>) attributes {dimension_semantics = [#tpu.dimension_semantics<parallel>], iteration_bounds = array<i64: 2>, scalar_prefetch = 0 : i64, scratch_operands = 0 : i64, tpu.core_type = #tpu.core_type<tc>, window_params = [{transform_indices = @transform_0, window_bounds = array<i64: 1, 4, 256>}, {pipeline_mode = #tpu.pipeline_mode<synchronous>, transform_indices = @transform_1, window_bounds = array<i64: 16, 4>}, {pipeline_mode = #tpu.pipeline_mode<synchronous>, transform_indices = @transform_2, window_bounds = array<i64: 16, 1>}, {pipeline_mode = #tpu.pipeline_mode<synchronous>, transform_indices = @transform_3, window_bounds = array<i64: 6, 4, 12>}, {pipeline_mode = #tpu.pipeline_mode<synchronous>, transform_indices = @transform_4, window_bounds = array<i64: 6, 4, 1>}, {pipeline_mode = #tpu.pipeline_mode<synchronous>, transform_indices = @transform_5, window_bounds = array<i64: 6, 4, 12>}, {pipeline_mode = #tpu.pipeline_mode<synchronous>, transform_indices = @transform_6, window_bounds = array<i64: 6, 4, 1>}, {transform_indices = @transform_7, window_bounds = array<i64: 1, 16, 256>}]} {
    %c0 = arith.constant 0 : index
    %c0_0 = arith.constant 0 : index
    %c0_1 = arith.constant 0 : index
    %0 = vector.load %arg1[%c0, %c0_0, %c0_1] : memref<1x4x256xf32, #tpu.memory_space<vmem>>, vector<1x4x256xf32>
    %1 = vector.shape_cast %0 : vector<1x4x256xf32> to vector<4x256xf32>
    %2 = tpu.iota {dimensions = array<i32: 1>} : vector<1x256xi32>
    %c16_i32 = arith.constant 16 : i32
    %c0_i32 = arith.constant 0 : i32
    %3 = arith.cmpi eq, %c16_i32, %c0_i32 : i32
    %c1_i32 = arith.constant 1 : i32
    %4 = arith.select %3, %c1_i32, %c16_i32 : i32
    %5 = vector.broadcast %4 : i32 to vector<1x256xi32>
    %6 = arith.remsi %2, %5 : vector<1x256xi32>
    %c0_i32_2 = arith.constant 0 : i32
    %7 = vector.broadcast %c0_i32_2 : i32 to vector<1x256xi32>
    %8 = arith.cmpi ne, %6, %7 : vector<1x256xi32>
    %c0_i32_3 = arith.constant 0 : i32
    %9 = vector.broadcast %c0_i32_3 : i32 to vector<1x256xi32>
    %10 = arith.cmpi slt, %6, %9 : vector<1x256xi32>
    %c0_i32_4 = arith.constant 0 : i32
    %11 = arith.cmpi slt, %4, %c0_i32_4 : i32
    %12 = vector.broadcast %11 : i1 to vector<1x256xi1>
    %13 = vector.broadcast %12 : vector<1x256xi1> to vector<1x256xi1>
    %14 = arith.xori %10, %13 : vector<1x256xi1>
    %15 = arith.andi %14, %8 : vector<1x256xi1>
    %16 = vector.broadcast %4 : i32 to vector<1x256xi32>
    %17 = arith.addi %6, %16 : vector<1x256xi32>
    %18 = arith.select %15, %17, %6 : vector<1x256xi1>, vector<1x256xi32>
    %c0_i32_5 = arith.constant 0 : i32
    %19 = vector.broadcast %c0_i32_5 : i32 to vector<1x256xi32>
    %20 = arith.cmpi ne, %18, %19 : vector<1x256xi32>
    %21 = arith.extui %20 : vector<1x256xi1> to vector<1x256xi32>
    %22 = arith.sitofp %21 : vector<1x256xi32> to vector<1x256xf32>
    %c15_i32 = arith.constant 15 : i32
    %23 = vector.broadcast %c15_i32 : i32 to vector<1x256xi32>
    %24 = arith.cmpi ne, %18, %23 : vector<1x256xi32>
    %25 = arith.extui %24 : vector<1x256xi1> to vector<1x256xi32>
    %26 = arith.sitofp %25 : vector<1x256xi32> to vector<1x256xf32>
    %c16_i32_6 = arith.constant 16 : i32
    %27 = vector.broadcast %c16_i32_6 : i32 to vector<1x256xi32>
    %28 = arith.cmpi sge, %2, %27 : vector<1x256xi32>
    %29 = arith.extui %28 : vector<1x256xi1> to vector<1x256xi32>
    %30 = arith.sitofp %29 : vector<1x256xi32> to vector<1x256xf32>
    %c240_i32 = arith.constant 240 : i32
    %31 = vector.broadcast %c240_i32 : i32 to vector<1x256xi32>
    %32 = arith.cmpi slt, %2, %31 : vector<1x256xi32>
    %33 = arith.extui %32 : vector<1x256xi1> to vector<1x256xi32>
    %34 = arith.sitofp %33 : vector<1x256xi32> to vector<1x256xf32>
    %c0_7 = arith.constant 0 : index
    %c0_8 = arith.constant 0 : index
    %35 = vector.load %arg2[%c0_7, %c0_8] : memref<16x4xf32, #tpu.memory_space<vmem>>, vector<16x4xf32>
    %cst = arith.constant dense<0.000000e+00> : vector<16x256xf32>
    %36 = tpu.matmul %35, %1, %cst {dimension_numbers = #tpu.dot_dimension_numbers<[1], [0], [0], [1], [0, 0, 1, 1], [], []>} : vector<16x4xf32>, vector<4x256xf32>, vector<16x256xf32> -> vector<16x256xf32>
    %c0_9 = arith.constant 0 : index
    %c0_10 = arith.constant 0 : index
    %37 = vector.load %arg3[%c0_9, %c0_10] : memref<16x1xf32, #tpu.memory_space<vmem>>, vector<16x1xf32>
    %38 = vector.broadcast %37 : vector<16x1xf32> to vector<16x256xf32>
    %39 = arith.addf %36, %38 : vector<16x256xf32>
    %40 = vector.extract_strided_slice %39 {offsets = [0, 0], sizes = [4, 256], strides = [1, 1]} : vector<16x256xf32> to vector<4x256xf32>
    %c0_11 = arith.constant 0 : index
    %c0_12 = arith.constant 0 : index
    %c0_13 = arith.constant 0 : index
    %41 = vector.load %arg8[%c0_11, %c0_12, %c0_13] : memref<1x16x256xf32, #tpu.memory_space<vmem>>, vector<1x4x256xf32>
    %42 = vector.shape_cast %41 : vector<1x4x256xf32> to vector<4x256xf32>
    %43 = vector.shape_cast %40 : vector<4x256xf32> to vector<1x4x256xf32>
    tpu.vector_store %arg8[%c0_11, %c0_12, %c0_13], %43 {strides = array<i32>} : memref<1x16x256xf32, #tpu.memory_space<vmem>>, vector<1x4x256xf32>,
    %44 = vector.extract_strided_slice %39 {offsets = [4, 0], sizes = [4, 256], strides = [1, 1]} : vector<16x256xf32> to vector<4x256xf32>
    %c1_i32_14 = arith.constant 1 : i32
    %45 = tpu.dynamic_rotate %44 by %c1_i32_14 dim 1 : vector<4x256xf32>, i32 -> vector<4x256xf32>
    %46 = vector.broadcast %22 : vector<1x256xf32> to vector<4x256xf32>
    %47 = arith.mulf %45, %46 : vector<4x256xf32>
    %c255_i32 = arith.constant 255 : i32
    %48 = tpu.dynamic_rotate %44 by %c255_i32 dim 1 : vector<4x256xf32>, i32 -> vector<4x256xf32>
    %49 = vector.broadcast %26 : vector<1x256xf32> to vector<4x256xf32>
    %50 = arith.mulf %48, %49 : vector<4x256xf32>
    %51 = tpu.concatenate %47, %44, %50 in 0 : vector<4x256xf32>, vector<4x256xf32>, vector<4x256xf32> -> vector<12x256xf32>
    %c0_15 = arith.constant 0 : index
    %c0_16 = arith.constant 0 : index
    %c0_17 = arith.constant 0 : index
    %52 = vector.load %arg4[%c0_15, %c0_16, %c0_17] : memref<6x4x12xf32, #tpu.memory_space<vmem>>, vector<1x4x12xf32>
    %53 = vector.shape_cast %52 : vector<1x4x12xf32> to vector<4x12xf32>
    %cst_18 = arith.constant dense<0.000000e+00> : vector<4x256xf32>
    %54 = tpu.matmul %53, %51, %cst_18 {dimension_numbers = #tpu.dot_dimension_numbers<[1], [0], [0], [1], [0, 0, 1, 1], [], []>} : vector<4x12xf32>, vector<12x256xf32>, vector<4x256xf32> -> vector<4x256xf32>
    %c0_19 = arith.constant 0 : index
    %c0_20 = arith.constant 0 : index
    %c0_21 = arith.constant 0 : index
    %55 = vector.load %arg5[%c0_19, %c0_20, %c0_21] : memref<6x4x1xf32, #tpu.memory_space<vmem>>, vector<1x4x1xf32>
    %56 = vector.shape_cast %55 : vector<1x4x1xf32> to vector<4x1xf32>
    %57 = vector.broadcast %56 : vector<4x1xf32> to vector<4x256xf32>
    %58 = arith.addf %54, %57 : vector<4x256xf32>
    %c16_i32_22 = arith.constant 16 : i32
    %59 = tpu.dynamic_rotate %58 by %c16_i32_22 dim 1 : vector<4x256xf32>, i32 -> vector<4x256xf32>
    %60 = vector.broadcast %30 : vector<1x256xf32> to vector<4x256xf32>
    %61 = arith.mulf %59, %60 : vector<4x256xf32>
    %c240_i32_23 = arith.constant 240 : i32
    %62 = tpu.dynamic_rotate %58 by %c240_i32_23 dim 1 : vector<4x256xf32>, i32 -> vector<4x256xf32>
    %63 = vector.broadcast %34 : vector<1x256xf32> to vector<4x256xf32>
    %64 = arith.mulf %62, %63 : vector<4x256xf32>
    %65 = tpu.concatenate %61, %58, %64 in 0 : vector<4x256xf32>, vector<4x256xf32>, vector<4x256xf32> -> vector<12x256xf32>
    %c0_24 = arith.constant 0 : index
    %c0_25 = arith.constant 0 : index
    %c0_26 = arith.constant 0 : index
    %66 = vector.load %arg6[%c0_24, %c0_25, %c0_26] : memref<6x4x12xf32, #tpu.memory_space<vmem>>, vector<1x4x12xf32>
    %67 = vector.shape_cast %66 : vector<1x4x12xf32> to vector<4x12xf32>
    %cst_27 = arith.constant dense<0.000000e+00> : vector<4x256xf32>
    %68 = tpu.matmul %67, %65, %cst_27 {dimension_numbers = #tpu.dot_dimension_numbers<[1], [0], [0], [1], [0, 0, 1, 1], [], []>} : vector<4x12xf32>, vector<12x256xf32>, vector<4x256xf32> -> vector<4x256xf32>
    %c0_28 = arith.constant 0 : index
    %c0_29 = arith.constant 0 : index
    %c0_30 = arith.constant 0 : index
    %69 = vector.load %arg7[%c0_28, %c0_29, %c0_30] : memref<6x4x1xf32, #tpu.memory_space<vmem>>, vector<1x4x1xf32>
    %70 = vector.shape_cast %69 : vector<1x4x1xf32> to vector<4x1xf32>
    %71 = vector.broadcast %70 : vector<4x1xf32> to vector<4x256xf32>
    %72 = arith.addf %68, %71 : vector<4x256xf32>
    %c0_31 = arith.constant 0 : index
    %c4 = arith.constant 4 : index
    %c0_32 = arith.constant 0 : index
    %73 = vector.load %arg8[%c0_31, %c4, %c0_32] : memref<1x16x256xf32, #tpu.memory_space<vmem>>, vector<1x4x256xf32>
    %74 = vector.shape_cast %73 : vector<1x4x256xf32> to vector<4x256xf32>
    %75 = vector.shape_cast %72 : vector<4x256xf32> to vector<1x4x256xf32>
    tpu.vector_store %arg8[%c0_31, %c4, %c0_32], %75 {strides = array<i32>} : memref<1x16x256xf32, #tpu.memory_space<vmem>>, vector<1x4x256xf32>,
    %76 = vector.extract_strided_slice %39 {offsets = [8, 0], sizes = [4, 256], strides = [1, 1]} : vector<16x256xf32> to vector<4x256xf32>
    %c1_i32_33 = arith.constant 1 : i32
    %77 = tpu.dynamic_rotate %76 by %c1_i32_33 dim 1 : vector<4x256xf32>, i32 -> vector<4x256xf32>
    %78 = vector.broadcast %22 : vector<1x256xf32> to vector<4x256xf32>
    %79 = arith.mulf %77, %78 : vector<4x256xf32>
    %c255_i32_34 = arith.constant 255 : i32
    %80 = tpu.dynamic_rotate %76 by %c255_i32_34 dim 1 : vector<4x256xf32>, i32 -> vector<4x256xf32>
    %81 = vector.broadcast %26 : vector<1x256xf32> to vector<4x256xf32>
    %82 = arith.mulf %80, %81 : vector<4x256xf32>
    %83 = tpu.concatenate %79, %76, %82 in 0 : vector<4x256xf32>, vector<4x256xf32>, vector<4x256xf32> -> vector<12x256xf32>
    %c1 = arith.constant 1 : index
    %c0_35 = arith.constant 0 : index
    %c0_36 = arith.constant 0 : index
    %84 = vector.load %arg4[%c1, %c0_35, %c0_36] : memref<6x4x12xf32, #tpu.memory_space<vmem>>, vector<1x4x12xf32>
    %85 = vector.shape_cast %84 : vector<1x4x12xf32> to vector<4x12xf32>
    %cst_37 = arith.constant dense<0.000000e+00> : vector<4x256xf32>
    %86 = tpu.matmul %85, %83, %cst_37 {dimension_numbers = #tpu.dot_dimension_numbers<[1], [0], [0], [1], [0, 0, 1, 1], [], []>} : vector<4x12xf32>, vector<12x256xf32>, vector<4x256xf32> -> vector<4x256xf32>
    %c1_38 = arith.constant 1 : index
    %c0_39 = arith.constant 0 : index
    %c0_40 = arith.constant 0 : index
    %87 = vector.load %arg5[%c1_38, %c0_39, %c0_40] : memref<6x4x1xf32, #tpu.memory_space<vmem>>, vector<1x4x1xf32>
    %88 = vector.shape_cast %87 : vector<1x4x1xf32> to vector<4x1xf32>
    %89 = vector.broadcast %88 : vector<4x1xf32> to vector<4x256xf32>
    %90 = arith.addf %86, %89 : vector<4x256xf32>
    %c16_i32_41 = arith.constant 16 : i32
    %91 = tpu.dynamic_rotate %90 by %c16_i32_41 dim 1 : vector<4x256xf32>, i32 -> vector<4x256xf32>
    %92 = vector.broadcast %30 : vector<1x256xf32> to vector<4x256xf32>
    %93 = arith.mulf %91, %92 : vector<4x256xf32>
    %c240_i32_42 = arith.constant 240 : i32
    %94 = tpu.dynamic_rotate %90 by %c240_i32_42 dim 1 : vector<4x256xf32>, i32 -> vector<4x256xf32>
    %95 = vector.broadcast %34 : vector<1x256xf32> to vector<4x256xf32>
    %96 = arith.mulf %94, %95 : vector<4x256xf32>
    %97 = tpu.concatenate %93, %90, %96 in 0 : vector<4x256xf32>, vector<4x256xf32>, vector<4x256xf32> -> vector<12x256xf32>
    %c1_43 = arith.constant 1 : index
    %c0_44 = arith.constant 0 : index
    %c0_45 = arith.constant 0 : index
    %98 = vector.load %arg6[%c1_43, %c0_44, %c0_45] : memref<6x4x12xf32, #tpu.memory_space<vmem>>, vector<1x4x12xf32>
    %99 = vector.shape_cast %98 : vector<1x4x12xf32> to vector<4x12xf32>
    %cst_46 = arith.constant dense<0.000000e+00> : vector<4x256xf32>
    %100 = tpu.matmul %99, %97, %cst_46 {dimension_numbers = #tpu.dot_dimension_numbers<[1], [0], [0], [1], [0, 0, 1, 1], [], []>} : vector<4x12xf32>, vector<12x256xf32>, vector<4x256xf32> -> vector<4x256xf32>
    %c1_47 = arith.constant 1 : index
    %c0_48 = arith.constant 0 : index
    %c0_49 = arith.constant 0 : index
    %101 = vector.load %arg7[%c1_47, %c0_48, %c0_49] : memref<6x4x1xf32, #tpu.memory_space<vmem>>, vector<1x4x1xf32>
    %102 = vector.shape_cast %101 : vector<1x4x1xf32> to vector<4x1xf32>
    %103 = vector.broadcast %102 : vector<4x1xf32> to vector<4x256xf32>
    %104 = arith.addf %100, %103 : vector<4x256xf32>
    %c1_i32_50 = arith.constant 1 : i32
    %105 = tpu.dynamic_rotate %104 by %c1_i32_50 dim 1 : vector<4x256xf32>, i32 -> vector<4x256xf32>
    %106 = vector.broadcast %22 : vector<1x256xf32> to vector<4x256xf32>
    %107 = arith.mulf %105, %106 : vector<4x256xf32>
    %c255_i32_51 = arith.constant 255 : i32
    %108 = tpu.dynamic_rotate %104 by %c255_i32_51 dim 1 : vector<4x256xf32>, i32 -> vector<4x256xf32>
    %109 = vector.broadcast %26 : vector<1x256xf32> to vector<4x256xf32>
    %110 = arith.mulf %108, %109 : vector<4x256xf32>
    %111 = tpu.concatenate %107, %104, %110 in 0 : vector<4x256xf32>, vector<4x256xf32>, vector<4x256xf32> -> vector<12x256xf32>
    %c2 = arith.constant 2 : index
    %c0_52 = arith.constant 0 : index
    %c0_53 = arith.constant 0 : index
    %112 = vector.load %arg4[%c2, %c0_52, %c0_53] : memref<6x4x12xf32, #tpu.memory_space<vmem>>, vector<1x4x12xf32>
    %113 = vector.shape_cast %112 : vector<1x4x12xf32> to vector<4x12xf32>
    %cst_54 = arith.constant dense<0.000000e+00> : vector<4x256xf32>
    %114 = tpu.matmul %113, %111, %cst_54 {dimension_numbers = #tpu.dot_dimension_numbers<[1], [0], [0], [1], [0, 0, 1, 1], [], []>} : vector<4x12xf32>, vector<12x256xf32>, vector<4x256xf32> -> vector<4x256xf32>
    %c2_55 = arith.constant 2 : index
    %c0_56 = arith.constant 0 : index
    %c0_57 = arith.constant 0 : index
    %115 = vector.load %arg5[%c2_55, %c0_56, %c0_57] : memref<6x4x1xf32, #tpu.memory_space<vmem>>, vector<1x4x1xf32>
    %116 = vector.shape_cast %115 : vector<1x4x1xf32> to vector<4x1xf32>
    %117 = vector.broadcast %116 : vector<4x1xf32> to vector<4x256xf32>
    %118 = arith.addf %114, %117 : vector<4x256xf32>
    %c16_i32_58 = arith.constant 16 : i32
    %119 = tpu.dynamic_rotate %118 by %c16_i32_58 dim 1 : vector<4x256xf32>, i32 -> vector<4x256xf32>
    %120 = vector.broadcast %30 : vector<1x256xf32> to vector<4x256xf32>
    %121 = arith.mulf %119, %120 : vector<4x256xf32>
    %c240_i32_59 = arith.constant 240 : i32
    %122 = tpu.dynamic_rotate %118 by %c240_i32_59 dim 1 : vector<4x256xf32>, i32 -> vector<4x256xf32>
    %123 = vector.broadcast %34 : vector<1x256xf32> to vector<4x256xf32>
    %124 = arith.mulf %122, %123 : vector<4x256xf32>
    %125 = tpu.concatenate %121, %118, %124 in 0 : vector<4x256xf32>, vector<4x256xf32>, vector<4x256xf32> -> vector<12x256xf32>
    %c2_60 = arith.constant 2 : index
    %c0_61 = arith.constant 0 : index
    %c0_62 = arith.constant 0 : index
    %126 = vector.load %arg6[%c2_60, %c0_61, %c0_62] : memref<6x4x12xf32, #tpu.memory_space<vmem>>, vector<1x4x12xf32>
    %127 = vector.shape_cast %126 : vector<1x4x12xf32> to vector<4x12xf32>
    %cst_63 = arith.constant dense<0.000000e+00> : vector<4x256xf32>
    %128 = tpu.matmul %127, %125, %cst_63 {dimension_numbers = #tpu.dot_dimension_numbers<[1], [0], [0], [1], [0, 0, 1, 1], [], []>} : vector<4x12xf32>, vector<12x256xf32>, vector<4x256xf32> -> vector<4x256xf32>
    %c2_64 = arith.constant 2 : index
    %c0_65 = arith.constant 0 : index
    %c0_66 = arith.constant 0 : index
    %129 = vector.load %arg7[%c2_64, %c0_65, %c0_66] : memref<6x4x1xf32, #tpu.memory_space<vmem>>, vector<1x4x1xf32>
    %130 = vector.shape_cast %129 : vector<1x4x1xf32> to vector<4x1xf32>
    %131 = vector.broadcast %130 : vector<4x1xf32> to vector<4x256xf32>
    %132 = arith.addf %128, %131 : vector<4x256xf32>
    %c0_67 = arith.constant 0 : index
    %c8 = arith.constant 8 : index
    %c0_68 = arith.constant 0 : index
    %133 = vector.load %arg8[%c0_67, %c8, %c0_68] : memref<1x16x256xf32, #tpu.memory_space<vmem>>, vector<1x4x256xf32>
    %134 = vector.shape_cast %133 : vector<1x4x256xf32> to vector<4x256xf32>
    %135 = vector.shape_cast %132 : vector<4x256xf32> to vector<1x4x256xf32>
    tpu.vector_store %arg8[%c0_67, %c8, %c0_68], %135 {strides = array<i32>} : memref<1x16x256xf32, #tpu.memory_space<vmem>>, vector<1x4x256xf32>,
    %136 = vector.extract_strided_slice %39 {offsets = [12, 0], sizes = [4, 256], strides = [1, 1]} : vector<16x256xf32> to vector<4x256xf32>
    %c1_i32_69 = arith.constant 1 : i32
    %137 = tpu.dynamic_rotate %136 by %c1_i32_69 dim 1 : vector<4x256xf32>, i32 -> vector<4x256xf32>
    %138 = vector.broadcast %22 : vector<1x256xf32> to vector<4x256xf32>
    %139 = arith.mulf %137, %138 : vector<4x256xf32>
    %c255_i32_70 = arith.constant 255 : i32
    %140 = tpu.dynamic_rotate %136 by %c255_i32_70 dim 1 : vector<4x256xf32>, i32 -> vector<4x256xf32>
    %141 = vector.broadcast %26 : vector<1x256xf32> to vector<4x256xf32>
    %142 = arith.mulf %140, %141 : vector<4x256xf32>
    %143 = tpu.concatenate %139, %136, %142 in 0 : vector<4x256xf32>, vector<4x256xf32>, vector<4x256xf32> -> vector<12x256xf32>
    %c3 = arith.constant 3 : index
    %c0_71 = arith.constant 0 : index
    %c0_72 = arith.constant 0 : index
    %144 = vector.load %arg4[%c3, %c0_71, %c0_72] : memref<6x4x12xf32, #tpu.memory_space<vmem>>, vector<1x4x12xf32>
    %145 = vector.shape_cast %144 : vector<1x4x12xf32> to vector<4x12xf32>
    %cst_73 = arith.constant dense<0.000000e+00> : vector<4x256xf32>
    %146 = tpu.matmul %145, %143, %cst_73 {dimension_numbers = #tpu.dot_dimension_numbers<[1], [0], [0], [1], [0, 0, 1, 1], [], []>} : vector<4x12xf32>, vector<12x256xf32>, vector<4x256xf32> -> vector<4x256xf32>
    %c3_74 = arith.constant 3 : index
    %c0_75 = arith.constant 0 : index
    %c0_76 = arith.constant 0 : index
    %147 = vector.load %arg5[%c3_74, %c0_75, %c0_76] : memref<6x4x1xf32, #tpu.memory_space<vmem>>, vector<1x4x1xf32>
    %148 = vector.shape_cast %147 : vector<1x4x1xf32> to vector<4x1xf32>
    %149 = vector.broadcast %148 : vector<4x1xf32> to vector<4x256xf32>
    %150 = arith.addf %146, %149 : vector<4x256xf32>
    %c16_i32_77 = arith.constant 16 : i32
    %151 = tpu.dynamic_rotate %150 by %c16_i32_77 dim 1 : vector<4x256xf32>, i32 -> vector<4x256xf32>
    %152 = vector.broadcast %30 : vector<1x256xf32> to vector<4x256xf32>
    %153 = arith.mulf %151, %152 : vector<4x256xf32>
    %c240_i32_78 = arith.constant 240 : i32
    %154 = tpu.dynamic_rotate %150 by %c240_i32_78 dim 1 : vector<4x256xf32>, i32 -> vector<4x256xf32>
    %155 = vector.broadcast %34 : vector<1x256xf32> to vector<4x256xf32>
    %156 = arith.mulf %154, %155 : vector<4x256xf32>
    %157 = tpu.concatenate %153, %150, %156 in 0 : vector<4x256xf32>, vector<4x256xf32>, vector<4x256xf32> -> vector<12x256xf32>
    %c3_79 = arith.constant 3 : index
    %c0_80 = arith.constant 0 : index
    %c0_81 = arith.constant 0 : index
    %158 = vector.load %arg6[%c3_79, %c0_80, %c0_81] : memref<6x4x12xf32, #tpu.memory_space<vmem>>, vector<1x4x12xf32>
    %159 = vector.shape_cast %158 : vector<1x4x12xf32> to vector<4x12xf32>
    %cst_82 = arith.constant dense<0.000000e+00> : vector<4x256xf32>
    %160 = tpu.matmul %159, %157, %cst_82 {dimension_numbers = #tpu.dot_dimension_numbers<[1], [0], [0], [1], [0, 0, 1, 1], [], []>} : vector<4x12xf32>, vector<12x256xf32>, vector<4x256xf32> -> vector<4x256xf32>
    %c3_83 = arith.constant 3 : index
    %c0_84 = arith.constant 0 : index
    %c0_85 = arith.constant 0 : index
    %161 = vector.load %arg7[%c3_83, %c0_84, %c0_85] : memref<6x4x1xf32, #tpu.memory_space<vmem>>, vector<1x4x1xf32>
    %162 = vector.shape_cast %161 : vector<1x4x1xf32> to vector<4x1xf32>
    %163 = vector.broadcast %162 : vector<4x1xf32> to vector<4x256xf32>
    %164 = arith.addf %160, %163 : vector<4x256xf32>
    %c1_i32_86 = arith.constant 1 : i32
    %165 = tpu.dynamic_rotate %164 by %c1_i32_86 dim 1 : vector<4x256xf32>, i32 -> vector<4x256xf32>
    %166 = vector.broadcast %22 : vector<1x256xf32> to vector<4x256xf32>
    %167 = arith.mulf %165, %166 : vector<4x256xf32>
    %c255_i32_87 = arith.constant 255 : i32
    %168 = tpu.dynamic_rotate %164 by %c255_i32_87 dim 1 : vector<4x256xf32>, i32 -> vector<4x256xf32>
    %169 = vector.broadcast %26 : vector<1x256xf32> to vector<4x256xf32>
    %170 = arith.mulf %168, %169 : vector<4x256xf32>
    %171 = tpu.concatenate %167, %164, %170 in 0 : vector<4x256xf32>, vector<4x256xf32>, vector<4x256xf32> -> vector<12x256xf32>
    %c4_88 = arith.constant 4 : index
    %c0_89 = arith.constant 0 : index
    %c0_90 = arith.constant 0 : index
    %172 = vector.load %arg4[%c4_88, %c0_89, %c0_90] : memref<6x4x12xf32, #tpu.memory_space<vmem>>, vector<1x4x12xf32>
    %173 = vector.shape_cast %172 : vector<1x4x12xf32> to vector<4x12xf32>
    %cst_91 = arith.constant dense<0.000000e+00> : vector<4x256xf32>
    %174 = tpu.matmul %173, %171, %cst_91 {dimension_numbers = #tpu.dot_dimension_numbers<[1], [0], [0], [1], [0, 0, 1, 1], [], []>} : vector<4x12xf32>, vector<12x256xf32>, vector<4x256xf32> -> vector<4x256xf32>
    %c4_92 = arith.constant 4 : index
    %c0_93 = arith.constant 0 : index
    %c0_94 = arith.constant 0 : index
    %175 = vector.load %arg5[%c4_92, %c0_93, %c0_94] : memref<6x4x1xf32, #tpu.memory_space<vmem>>, vector<1x4x1xf32>
    %176 = vector.shape_cast %175 : vector<1x4x1xf32> to vector<4x1xf32>
    %177 = vector.broadcast %176 : vector<4x1xf32> to vector<4x256xf32>
    %178 = arith.addf %174, %177 : vector<4x256xf32>
    %c16_i32_95 = arith.constant 16 : i32
    %179 = tpu.dynamic_rotate %178 by %c16_i32_95 dim 1 : vector<4x256xf32>, i32 -> vector<4x256xf32>
    %180 = vector.broadcast %30 : vector<1x256xf32> to vector<4x256xf32>
    %181 = arith.mulf %179, %180 : vector<4x256xf32>
    %c240_i32_96 = arith.constant 240 : i32
    %182 = tpu.dynamic_rotate %178 by %c240_i32_96 dim 1 : vector<4x256xf32>, i32 -> vector<4x256xf32>
    %183 = vector.broadcast %34 : vector<1x256xf32> to vector<4x256xf32>
    %184 = arith.mulf %182, %183 : vector<4x256xf32>
    %185 = tpu.concatenate %181, %178, %184 in 0 : vector<4x256xf32>, vector<4x256xf32>, vector<4x256xf32> -> vector<12x256xf32>
    %c4_97 = arith.constant 4 : index
    %c0_98 = arith.constant 0 : index
    %c0_99 = arith.constant 0 : index
    %186 = vector.load %arg6[%c4_97, %c0_98, %c0_99] : memref<6x4x12xf32, #tpu.memory_space<vmem>>, vector<1x4x12xf32>
    %187 = vector.shape_cast %186 : vector<1x4x12xf32> to vector<4x12xf32>
    %cst_100 = arith.constant dense<0.000000e+00> : vector<4x256xf32>
    %188 = tpu.matmul %187, %185, %cst_100 {dimension_numbers = #tpu.dot_dimension_numbers<[1], [0], [0], [1], [0, 0, 1, 1], [], []>} : vector<4x12xf32>, vector<12x256xf32>, vector<4x256xf32> -> vector<4x256xf32>
    %c4_101 = arith.constant 4 : index
    %c0_102 = arith.constant 0 : index
    %c0_103 = arith.constant 0 : index
    %189 = vector.load %arg7[%c4_101, %c0_102, %c0_103] : memref<6x4x1xf32, #tpu.memory_space<vmem>>, vector<1x4x1xf32>
    %190 = vector.shape_cast %189 : vector<1x4x1xf32> to vector<4x1xf32>
    %191 = vector.broadcast %190 : vector<4x1xf32> to vector<4x256xf32>
    %192 = arith.addf %188, %191 : vector<4x256xf32>
    %c1_i32_104 = arith.constant 1 : i32
    %193 = tpu.dynamic_rotate %192 by %c1_i32_104 dim 1 : vector<4x256xf32>, i32 -> vector<4x256xf32>
    %194 = vector.broadcast %22 : vector<1x256xf32> to vector<4x256xf32>
    %195 = arith.mulf %193, %194 : vector<4x256xf32>
    %c255_i32_105 = arith.constant 255 : i32
    %196 = tpu.dynamic_rotate %192 by %c255_i32_105 dim 1 : vector<4x256xf32>, i32 -> vector<4x256xf32>
    %197 = vector.broadcast %26 : vector<1x256xf32> to vector<4x256xf32>
    %198 = arith.mulf %196, %197 : vector<4x256xf32>
    %199 = tpu.concatenate %195, %192, %198 in 0 : vector<4x256xf32>, vector<4x256xf32>, vector<4x256xf32> -> vector<12x256xf32>
    %c5 = arith.constant 5 : index
    %c0_106 = arith.constant 0 : index
    %c0_107 = arith.constant 0 : index
    %200 = vector.load %arg4[%c5, %c0_106, %c0_107] : memref<6x4x12xf32, #tpu.memory_space<vmem>>, vector<1x4x12xf32>
    %201 = vector.shape_cast %200 : vector<1x4x12xf32> to vector<4x12xf32>
    %cst_108 = arith.constant dense<0.000000e+00> : vector<4x256xf32>
    %202 = tpu.matmul %201, %199, %cst_108 {dimension_numbers = #tpu.dot_dimension_numbers<[1], [0], [0], [1], [0, 0, 1, 1], [], []>} : vector<4x12xf32>, vector<12x256xf32>, vector<4x256xf32> -> vector<4x256xf32>
    %c5_109 = arith.constant 5 : index
    %c0_110 = arith.constant 0 : index
    %c0_111 = arith.constant 0 : index
    %203 = vector.load %arg5[%c5_109, %c0_110, %c0_111] : memref<6x4x1xf32, #tpu.memory_space<vmem>>, vector<1x4x1xf32>
    %204 = vector.shape_cast %203 : vector<1x4x1xf32> to vector<4x1xf32>
    %205 = vector.broadcast %204 : vector<4x1xf32> to vector<4x256xf32>
    %206 = arith.addf %202, %205 : vector<4x256xf32>
    %c16_i32_112 = arith.constant 16 : i32
    %207 = tpu.dynamic_rotate %206 by %c16_i32_112 dim 1 : vector<4x256xf32>, i32 -> vector<4x256xf32>
    %208 = vector.broadcast %30 : vector<1x256xf32> to vector<4x256xf32>
    %209 = arith.mulf %207, %208 : vector<4x256xf32>
    %c240_i32_113 = arith.constant 240 : i32
    %210 = tpu.dynamic_rotate %206 by %c240_i32_113 dim 1 : vector<4x256xf32>, i32 -> vector<4x256xf32>
    %211 = vector.broadcast %34 : vector<1x256xf32> to vector<4x256xf32>
    %212 = arith.mulf %210, %211 : vector<4x256xf32>
    %213 = tpu.concatenate %209, %206, %212 in 0 : vector<4x256xf32>, vector<4x256xf32>, vector<4x256xf32> -> vector<12x256xf32>
    %c5_114 = arith.constant 5 : index
    %c0_115 = arith.constant 0 : index
    %c0_116 = arith.constant 0 : index
    %214 = vector.load %arg6[%c5_114, %c0_115, %c0_116] : memref<6x4x12xf32, #tpu.memory_space<vmem>>, vector<1x4x12xf32>
    %215 = vector.shape_cast %214 : vector<1x4x12xf32> to vector<4x12xf32>
    %cst_117 = arith.constant dense<0.000000e+00> : vector<4x256xf32>
    %216 = tpu.matmul %215, %213, %cst_117 {dimension_numbers = #tpu.dot_dimension_numbers<[1], [0], [0], [1], [0, 0, 1, 1], [], []>} : vector<4x12xf32>, vector<12x256xf32>, vector<4x256xf32> -> vector<4x256xf32>
    %c5_118 = arith.constant 5 : index
    %c0_119 = arith.constant 0 : index
    %c0_120 = arith.constant 0 : index
    %217 = vector.load %arg7[%c5_118, %c0_119, %c0_120] : memref<6x4x1xf32, #tpu.memory_space<vmem>>, vector<1x4x1xf32>
    %218 = vector.shape_cast %217 : vector<1x4x1xf32> to vector<4x1xf32>
    %219 = vector.broadcast %218 : vector<4x1xf32> to vector<4x256xf32>
    %220 = arith.addf %216, %219 : vector<4x256xf32>
    %c0_121 = arith.constant 0 : index
    %c12 = arith.constant 12 : index
    %c0_122 = arith.constant 0 : index
    %221 = vector.load %arg8[%c0_121, %c12, %c0_122] : memref<1x16x256xf32, #tpu.memory_space<vmem>>, vector<1x4x256xf32>
    %222 = vector.shape_cast %221 : vector<1x4x256xf32> to vector<4x256xf32>
    %223 = vector.shape_cast %220 : vector<4x256xf32> to vector<1x4x256xf32>
    tpu.vector_store %arg8[%c0_121, %c12, %c0_122], %223 {strides = array<i32>} : memref<1x16x256xf32, #tpu.memory_space<vmem>>, vector<1x4x256xf32>,
    return
  }
  func.func @transform_0(%arg0: i32) -> (i32, i32, i32) {
    %c0_i32 = arith.constant 0 : i32
    %c0_i32_0 = arith.constant 0 : i32
    %c0_i32_1 = arith.constant 0 : i32
    return %arg0, %c0_i32, %c0_i32_0 : i32, i32, i32
  }
  func.func @transform_1(%arg0: i32) -> (i32, i32) {
    %c0_i32 = arith.constant 0 : i32
    %c0_i32_0 = arith.constant 0 : i32
    %c0_i32_1 = arith.constant 0 : i32
    return %c0_i32, %c0_i32_0 : i32, i32
  }
  func.func @transform_2(%arg0: i32) -> (i32, i32) {
    %c0_i32 = arith.constant 0 : i32
    %c0_i32_0 = arith.constant 0 : i32
    %c0_i32_1 = arith.constant 0 : i32
    return %c0_i32, %c0_i32_0 : i32, i32
  }
  func.func @transform_3(%arg0: i32) -> (i32, i32, i32) {
    %c0_i32 = arith.constant 0 : i32
    %c0_i32_0 = arith.constant 0 : i32
    %c0_i32_1 = arith.constant 0 : i32
    %c0_i32_2 = arith.constant 0 : i32
    return %c0_i32, %c0_i32_0, %c0_i32_1 : i32, i32, i32
  }
  func.func @transform_4(%arg0: i32) -> (i32, i32, i32) {
    %c0_i32 = arith.constant 0 : i32
    %c0_i32_0 = arith.constant 0 : i32
    %c0_i32_1 = arith.constant 0 : i32
    %c0_i32_2 = arith.constant 0 : i32
    return %c0_i32, %c0_i32_0, %c0_i32_1 : i32, i32, i32
  }
  func.func @transform_5(%arg0: i32) -> (i32, i32, i32) {
    %c0_i32 = arith.constant 0 : i32
    %c0_i32_0 = arith.constant 0 : i32
    %c0_i32_1 = arith.constant 0 : i32
    %c0_i32_2 = arith.constant 0 : i32
    return %c0_i32, %c0_i32_0, %c0_i32_1 : i32, i32, i32
  }
  func.func @transform_6(%arg0: i32) -> (i32, i32, i32) {
    %c0_i32 = arith.constant 0 : i32
    %c0_i32_0 = arith.constant 0 : i32
    %c0_i32_1 = arith.constant 0 : i32
    %c0_i32_2 = arith.constant 0 : i32
    return %c0_i32, %c0_i32_0, %c0_i32_1 : i32, i32, i32
  }
  func.func @transform_7(%arg0: i32) -> (i32, i32, i32) {
    %c0_i32 = arith.constant 0 : i32
    %c0_i32_0 = arith.constant 0 : i32
    %c0_i32_1 = arith.constant 0 : i32
    return %arg0, %c0_i32, %c0_i32_0 : i32, i32, i32
  }
}

</mosaic_0001>

<bundles_post_ra>
// kernel: tpu_custom_call.1
= control target key start
LH: loop header
LB: loop body
LE: loop exit
PB: predicated region body
PF: predicated region fallthrough
CT: control target
= control target key end

     0   :  { %12 = vsyncpa [#allocation3], 0  ;;  %s2749_s0 = inlined_call_operand.vmem [shape: f32[2,4,256], index: 0, kind: input, shape index: {}]   ;;  %s2750_s1 = inlined_call_operand.vmem [shape: f32[16,4], index: 1, kind: input, shape index: {}]   ;;  %s2751_s2 = inlined_call_operand.vmem [shape: f32[16,1], index: 2, kind: input, shape index: {}]   ;;  %s2752_s3 = inlined_call_operand.vmem [shape: f32[6,4,12], index: 3, kind: input, shape index: {}]   ;;  %s2753_s4 = inlined_call_operand.vmem [shape: f32[6,4,1], index: 4, kind: input, shape index: {}]   ;;  %s2754_s5 = inlined_call_operand.vmem [shape: f32[6,4,12], index: 5, kind: input, shape index: {}]   ;;  %s2755_s6 = inlined_call_operand.vmem [shape: f32[6,4,1], index: 6, kind: input, shape index: {}]   ;;  %s2756_s7 = inlined_call_operand.hbm [shape: f32[2,16,256], index: 7, kind: output, shape index: {}]  }
   0x1   :  { %14 = vsyncpa [#allocation3 + $0x1], 0  ;;  %s2196_s24 = smov 0   ;;  %s2198_s25 = smov 0  }
   0x2   :  { %s2200_s26 = smov 0   ;;  %s2202_s27 = smov 0  }
   0x3 LB: > { %s2217_s28 = sadd.s32 4294967295, %s2145_s27   ;;  %s1881_s29 = sadd.s32 4294967294, %s2145_s27   ;;  %s2145_s27 = sphi %s2202_s27, %s2764_s27   ;;  %s2141_s26 = sphi %s2200_s26, %s2763_s26   ;;  %s2137_s25 = sphi %s2198_s25, %s2762_s25   ;;  %s2133_s24 = sphi %s2196_s24, %s2761_s24  }
   0x4   : > { %s2221_s30 = sadd.s32 1, %s2145_s27   ;;  %s179_s8 = sadd.s32 1, %s2141_s26 }
   0x5   : > { %s176_s9 = ssub.s32 %s2145_s27, %s2221_s30  ;;  %p189_p0 = scmp.ne.s32.totalorder %s2141_s26, %s2137_s25 }
   0x6   : > { %p177_p1 = scmp.eq.s32.totalorder %s176_s9, 0  ;;  %p190_p2 = scmp.eq.s32.totalorder %s2217_s28, 1 }
   0x7   : > { %p195_p3 = scmp.ne.s32.totalorder %s2137_s25, %s2133_s24  ;;  %p196_p4 = scmp.eq.s32.totalorder %s1881_s29, 1 }
   0x8   : > { %s2232_s10 = scalar_select %p177_p1, %s2141_s26, %s179_s8  }
   0x9   : > { %p2234_p5 = por %p190_p2, %p189_p0  ;;  %p2238_p6 = por %p196_p4, %p195_p3 }
   0xa   : > { %p1884_p7 = scmp.ge.s32.totalorder %s2145_s27, 1  ;;  %p240_p8 = scmp.lt.s32.totalorder %s2145_s27, 3 }
   0xc   : > { %p241_p9 = pnand %p1884_p7, %p240_p8 }
   0xd   : > { %p272_p10 = scmp.lt.s32.totalorder (!%p241_p9), %s2217_s28, 1  ;;  %v2147_v0 = vmov (!%p241_p9), 0.0   ;;  %v331_v1 = vld [vmem:[%s2751_s2] sm:$0xff] (!%p241_p9)  ;;  %v2148_v2 = vmov (!%p241_p9), 0   ;;  %v332_v3 = vld [vmem:[%s2751_s2 + $0x8] sm:$0xff] (!%p241_p9)  ;;  %vm352_vm0 = vcmask (!%p241_p9), 1043456   ;;  %v278_v22 = vlaneseq (!%p241_p9) }
   0xe   : > { %244 = sbr.rel (%p241_p9) target bundleno = 3027 (0xbd3), region = 48  ;;  %421 = vmatprep.mubr.f32.mxu0 (!%p241_p9), %v2147_v0  ;;  %543 = vmatprep.mubr.f32.mxu1 (!%p241_p9), %v2147_v0  ;;  %v329_v6 = vld [vmem:[%s2750_s1] sm:$0xff] (!%p241_p9)  ;;  %vm345_vm1 = vcmask (!%p241_p9), 31744   ;;  %v330_v7 = vld [vmem:[%s2750_s1 + $0x8] sm:$0xff] (!%p241_p9)  ;;  %s269_s9 = sand.u32 (!%p241_p9), 1, %s2137_s25   ;;  %vm2151_vm8 = vmmov (!%p241_p9), 1  }
   0xf   : > { %2080 = vset.pattern.permute.xlu0 (!%p241_p9), %v2148_v2  ;;  %2081 = vset.pattern.permute.xlu1 (!%p241_p9), %v2148_v2  ;;  %s1885_s13 = sshll.u32 (!%p241_p9), %s269_s9, 5  ;;  %v463_v19 = vld [vmem:[%s2753_s4] sm:$0xf] (!%p241_p9)  ;;  %v1905_v21 = vld [vmem:[%s2753_s4 + $0x4] sm:$0xf] (!%p241_p9)  ;;  %v2296_v23 = vand.u32 (!%p241_p9), 127, %v278_v22  ;;  %vm2331_vm9 = vmpackc.low (!%p241_p9), %vm352_vm0, %vm2151_vm8 }
  0x10   : > { %335 = vperm.xlu0 (!%p241_p9), %2080, %v331_v1   ;;  %s2270_s14 = scalar_lea.vmem (!%p241_p9), [#allocation2], %s1885_s13  ;;  %v462_v54 = vld [vmem:[%s2752_s3] sm:$0xf] (!%p241_p9)  ;;  %vm469_vm10 = vcmask (!%p241_p9), 97280   ;;  %s2152_s8 = smov (!%p241_p9), 16  }
  0x11   : > { %v2299_v24 = vadd.s32 (!%p241_p9), 128, %v2296_v23  ;;  %v285_v25 = vand.u32 (!%p241_p9), 15, %v2296_v23  ;;  %vm446_vm4 = vcmp.lt.s32.totalorder (!%p241_p9), %v2296_v23, 1  ;;  %vm455_vm7 = vcmp.lt.s32.totalorder (!%p241_p9), %v2296_v23, 127  ;;  %s2153_s13 = smov (!%p241_p9), 112   ;;  %s1960_s22 = sshll.u32 (!%p241_p9), %s2217_s28, 9 }
  0x12   : > { %vm317_vm11 = vcmp.ge.s32.totalorder (!%p241_p9), %v2296_v23, 16  ;;  %vm554_vm12 = vcmp.lt.s32.totalorder (!%p241_p9), %v2296_v23, 16  ;;  %vm563_vm14 = vcmp.lt.s32.totalorder (!%p241_p9), %v2296_v23, 112  ;;  %v1949_v23 = vld [vmem:[%s2754_s5 + $0x14] sm:$0xf] (!%p241_p9)  ;;  %s2699_s29 = scalar_lea.hbm (!%p241_p9), %s2756_s7, %s1960_s22  ;;  %s2154_s18 = smov (!%p241_p9), [#allocation2]  }
  0x13   : > { %v292_v26 = vand.u32 (!%p241_p9), 15, %v2299_v24  ;;  %vm305_vm2 = vcmp.ne.s32.totalorder (!%p241_p9), %v285_v25, 0  ;;  %vm311_vm5 = vcmp.ne.s32.totalorder (!%p241_p9), %v285_v25, 15  ;;  %vm324_vm13 = vcmp.lt.s32.totalorder (!%p241_p9), %v2299_v24, 240  ;;  %s2087_s19 = sshll.u32 (!%p241_p9), %s2154_s18, 4  ;;  %s2088_s19 = int_to_ptr.vmem [resolvable:$false] %s2087_s19 }
  0x14   : > { %340 = vperm.xlu0 (!%p241_p9), %2080, %v332_v3   ;;  %v2305_v29 = vsel (!%p241_p9), %vm305_vm2, 1.0, %v2147_v0  ;;  %v2318_v36 = vsel (!%p241_p9), %vm311_vm5, 1.0, %v2147_v0  ;;  %s2089_s20 = scalar_lea.vmem (!%p241_p9), %s2088_s19, 1024 }
  0x15   : > { %s273_s15 = scalar_select %p272_p10, %s2217_s28, 1  ;;  %vm306_vm3 = vcmp.ne.s32.totalorder %v292_v26, 0  ;;  %vm312_vm6 = vcmp.ne.s32.totalorder %v292_v26, 15  ;;  %v2402_v26 = vsel %vm324_vm13, 1.0, %v2147_v0 }
  0x16   : > { %v2308_v30 = vsel %vm306_vm3, 1.0, %v2147_v0  ;;  %v2321_v37 = vsel %vm312_vm6, 1.0, %v2147_v0  ;;  %s2707_s28 = scalar_lea.sflag [#allocation3], %s269_s9 }
  0x17   : > { %s1959_s16 = sshll.u32 %s273_s15, 3  ;;  %s2149_s15 = smov 127  }
  0x18   : > { %s276_s21 = scalar_lea.vmem %s2749_s0, %s1959_s16  ;;  %s2150_s16 = smov 1  }
  0x19   : > { %v277_v4 = vld [vmem:[%s276_s21] sm:$0xff] }
  0x1a   : > { %v344_v5 = vcombine.high %v277_v4, %v277_v4 }
  0x1c   : > { %1894 = vmatprep.subr.msk.mxu0 %vm352_vm0, %v344_v5 }
  0x1d   : > { %1895 = vmatpush1.msk.msra.mxu0 %vm352_vm0, %v277_v4  ;;  %v1904_v4 = vld [vmem:[%s2752_s3 + $0x4] sm:$0xf] }
  0x1e   : > { %1896 = vmatmul.mubr.msk.f32.vlgmr.msra.gmra.mrb[0].mxu0 %vm345_vm1, %v329_v6 }
  0x1f   : > { %427 = vmatprep.mubr.f32.mxu0 %v2147_v0 }
  0x22   : > { %1897 = vmatmul.mubr.msk.f32.gmra.mrb[2].mxu0 %vm345_vm1, %v330_v7 }
  0x23   : > { %777 = vmatprep.mubr.f32.mxu0 %v2147_v0 }
  0x8f   : > { %v336_v8 = vpop.permute.xlu0 %335 }
  0x93   : > { %v341_v16 = vpop.permute.xlu0 %340 }
  0xf1   : > { %v423_v9 = vpop.f32.mrb[0].mxu0 }
  0xf2   : > { %v424_v10 = vadd.f32 %v423_v9, %v336_v8  ;;  %v425_v11 = vpop.f32.mrb[1].mxu0 }
  0xf3   : > { %v426_v12 = vadd.f32 %v425_v11, %v336_v8 }
  0xf4   : > { %434 = vst [vmem:[%s2270_s14] sm:$0xf] %v424_v10  ;;  %v438_v13 = vrot.slane %v424_v10, 4 }
  0xf5   : > { %435 = vst [vmem:[%s2270_s14 + $0x8] sm:$0xf] %v426_v12  ;;  %v429_v14 = vpop.f32.mrb[2].mxu0  ;;  %v439_v18 = vrot.slane %v426_v12, 4 }
  0xf6   : > { %v431_v15 = vpop.f32.mrb[3].mxu0  ;;  %451 = vrot.lane.b32.xlu0 %v438_v13, %s2149_s15  ;;  %442 = vrot.lane.b32.xlu1 %v438_v13, %s2150_s16  ;;  %v2276_v17 = vadd.f32 %v429_v14, %v341_v16 }
  0xf7   : > { %v2287_v20 = vadd.f32 %v431_v15, %v341_v16  ;;  %v1910_v15 = vld [vmem:[%s2755_s6 + $0x4] sm:$0xf] }
  0xf8   : > { %v2350_v57 = vrot.slane %v2276_v17, 4 }
  0xf9   : > { %v2353_v58 = vrot.slane %v2287_v20, 4 }
  0xfa   : > { %671 = vrot.lane.b32.xlu0 %v2276_v17, %s2150_s16  ;;  %444 = vrot.lane.b32.xlu1 %v439_v18, %s2150_s16 }
  0xfe   : > { %679 = vrot.lane.b32.xlu0 %v2276_v17, %s2149_s15  ;;  %453 = vrot.lane.b32.xlu1 %v439_v18, %s2149_s15  ;;  %v2394_v18 = vsel %vm317_vm11, 1.0, %v2147_v0 }
 0x102   : > { %466 = vperm.xlu0 %2080, %v463_v19   ;;  %673 = vrot.lane.b32.xlu1 %v2287_v20, %s2150_s16 }
 0x106   : > { %681 = vrot.lane.b32.xlu1 %v2287_v20, %s2149_s15 }
 0x10a   : > { %701 = vperm.xlu1 %2081, %v1905_v21  }
 0x168   : > { %v443_v27 = vpop.permute.xlu1 %442  ;;  %v452_v28 = vpop.permute.xlu0 %451 }
 0x16c   : > { %v445_v31 = vpop.permute.xlu1 %444  ;;  %v672_v41 = vpop.permute.xlu0 %671 }
 0x16d   : > { %v447_v32 = vsel %vm446_vm4, %v443_v27, %v445_v31  ;;  %v448_v33 = vsel %vm446_vm4, %v445_v31, %v443_v27 }
 0x16e   : > { %v449_v34 = vmul.f32 %v2305_v29, %v448_v33  ;;  %v450_v35 = vmul.f32 %v2308_v30, %v447_v32 }
 0x170   : > { %v454_v38 = vpop.permute.xlu1 %453  ;;  %v461_v44 = vsel %vm352_vm0, %v450_v35, %v426_v12  ;;  %v460_v46 = vsel %vm352_vm0, %v449_v34, %v424_v10  ;;  %v680_v55 = vpop.permute.xlu0 %679 }
 0x171   : > { %v456_v39 = vsel %vm455_vm7, %v452_v28, %v454_v38  ;;  %v457_v40 = vsel %vm455_vm7, %v454_v38, %v452_v28 }
 0x172   : > { %v458_v42 = vmul.f32 %v2318_v36, %v456_v39  ;;  %v459_v43 = vmul.f32 %v2321_v37, %v457_v40 }
 0x174   : > { %v674_v47 = vpop.permute.xlu1 %673  ;;  %v1961_v48 = vpack.c.bf16 %v459_v43, %v461_v44  ;;  %v1964_v49 = vpack.c.bf16 %v458_v42, %v460_v46 }
 0x175   : > { %v675_v50 = vsel %vm446_vm4, %v672_v41, %v674_v47  ;;  %v676_v51 = vsel %vm446_vm4, %v674_v47, %v672_v41  ;;  %v576_v47 = vld [vmem:[%s2754_s5] sm:$0xf] }
 0x176   : > { %1963 = vmatprep.subr.msk.bf16.mxu1 %vm2331_vm9, %v1961_v48  ;;  %v677_v52 = vmul.f32 %v2305_v29, %v676_v51  ;;  %v678_v53 = vmul.f32 %v2308_v30, %v675_v50 }
 0x177   : > { %1966 = vmatpush1.bf16.msk.msra.mxu1 %vm2331_vm9, %v1964_v49 }
 0x178   : > { %v682_v56 = vpop.permute.xlu1 %681  ;;  %v693_v63 = vsel %vm352_vm0, %v677_v52, %v2350_v57  ;;  %v694_v1 = vsel %vm352_vm0, %v678_v53, %v2353_v58 }
 0x179   : > { %v683_v59 = vsel %vm455_vm7, %v680_v55, %v682_v56  ;;  %v684_v60 = vsel %vm455_vm7, %v682_v56, %v680_v55 }
 0x17a   : > { %v685_v61 = vmul.f32 %v2318_v36, %v683_v59  ;;  %v686_v62 = vmul.f32 %v2321_v37, %v684_v60  ;;  %1900 = vmatmul.mubr.msk.f32.vlgmr.msra.gmra.mrb[0].mxu1 %vm469_vm10, %v462_v54 }
 0x17b   : > { %656 = vmatprep.mubr.f32.mxu1 %v2147_v0 }
 0x17c   : > { %v1973_v2 = vpack.c.bf16 %v686_v62, %v694_v1  ;;  %v1976_v3 = vpack.c.bf16 %v685_v61, %v693_v63  ;;  %v1909_v61 = vld [vmem:[%s2754_s5 + $0x4] sm:$0xf] }
 0x17e   : > { %1975 = vmatprep.subr.msk.bf16.mxu0 %vm2331_vm9, %v1973_v2 }
 0x17f   : > { %1978 = vmatpush1.bf16.msk.msra.mxu0 %vm2331_vm9, %v1976_v3 }
 0x181   : > { %v467_v5 = vpop.permute.xlu0 %466 }
 0x182   : > { %1908 = vmatmul.mubr.msk.f32.vlgmr.msra.gmra.mrb[4].mxu0 %vm469_vm10, %v1904_v4 }
 0x183   : > { %1003 = vmatprep.mubr.f32.mxu0 %v2147_v0 }
 0x189   : > { %v702_v10 = vpop.permute.xlu1 %701 }
 0x24d   : > { %v545_v6 = vpop.f32.mrb[0].mxu1 }
 0x24e   : > { %v546_v7 = vadd.f32 %v545_v6, %v467_v5  ;;  %v547_v8 = vpop.f32.mrb[1].mxu1  ;;  %v1915_v6 = vld [vmem:[%s2753_s4 + $0x8] sm:$0xf] }
 0x24f   : > { %v548_v9 = vadd.f32 %v547_v8, %v467_v5 }
 0x250   : > { %550 = vrot.lane.b32.xlu0 %v546_v7, %s2152_s8  ;;  %v570_v27 = vrot.slane %v546_v7, 4 }
 0x251   : > { %552 = vrot.lane.b32.xlu1 %v548_v9, %s2152_s8  ;;  %v571_v32 = vrot.slane %v548_v9, 4 }
 0x254   : > { %559 = vrot.lane.b32.xlu0 %v546_v7, %s2153_s13  ;;  %v1925_v7 = vld [vmem:[%s2753_s4 + $0xc] sm:$0xf] }
 0x255   : > { %561 = vrot.lane.b32.xlu1 %v548_v9, %s2153_s13  ;;  %v779_v11 = vpop.f32.mrb[4].mxu0 }
 0x256   : > { %v780_v12 = vadd.f32 %v779_v11, %v702_v10  ;;  %v781_v13 = vpop.f32.mrb[5].mxu0 }
 0x257   : > { %v782_v14 = vadd.f32 %v781_v13, %v702_v10 }
 0x258   : > { %784 = vrot.lane.b32.xlu0 %v780_v12, %s2152_s8  ;;  %v802_v48 = vrot.slane %v780_v12, 4 }
 0x259   : > { %786 = vrot.lane.b32.xlu1 %v782_v14, %s2152_s8  ;;  %v803_v51 = vrot.slane %v782_v14, 4 }
 0x25c   : > { %792 = vrot.lane.b32.xlu0 %v780_v12, %s2153_s13 }
 0x25d   : > { %794 = vrot.lane.b32.xlu1 %v782_v14, %s2153_s13 }
 0x260   : > { %814 = vperm.xlu0 %2080, %v1910_v15  }
 0x261   : > { %1125 = vrot.lane.b32.xlu1 %v2350_v57, %s2150_s16 }
 0x264   : > { %1127 = vrot.lane.b32.xlu0 %v2353_v58, %s2150_s16 }
 0x2c2   : > { %v551_v16 = vpop.permute.xlu0 %550 }
 0x2c3   : > { %v553_v19 = vpop.permute.xlu1 %552 }
 0x2c4   : > { %v556_v21 = vsel %vm554_vm12, %v553_v19, %v551_v16  ;;  %v555_v28 = vsel %vm554_vm12, %v551_v16, %v553_v19 }
 0x2c5   : > { %v557_v22 = vmul.f32 %v2394_v18, %v556_v21  ;;  %v575_v38 = vsel %vm352_vm0, %v555_v28, %v571_v32 }
 0x2c6   : > { %v560_v25 = vpop.permute.xlu0 %559 }
 0x2c7   : > { %v562_v31 = vpop.permute.xlu1 %561  ;;  %v574_v33 = vsel %vm352_vm0, %v557_v22, %v570_v27 }
 0x2c8   : > { %v565_v24 = vsel %vm563_vm14, %v562_v31, %v560_v25  ;;  %v564_v34 = vsel %vm563_vm14, %v560_v25, %v562_v31 }
 0x2c9   : > { %v567_v35 = vmul.f32 %v2402_v26, %v565_v24  ;;  %v1970_v42 = vpack.c.bf16 %v564_v34, %v574_v33 }
 0x2ca   : > { %v785_v39 = vpop.permute.xlu0 %784 }
 0x2cb   : > { %v1967_v40 = vpack.c.bf16 %v567_v35, %v575_v38  ;;  %v787_v41 = vpop.permute.xlu1 %786 }
 0x2cc   : > { %v789_v43 = vsel %vm554_vm12, %v787_v41, %v785_v39  ;;  %v788_v49 = vsel %vm554_vm12, %v785_v39, %v787_v41 }
 0x2cd   : > { %v790_v44 = vmul.f32 %v2394_v18, %v789_v43  ;;  %1969 = vmatprep.subr.msk.bf16.mxu1 %vm2331_vm9, %v1967_v40  ;;  %v807_v56 = vsel %vm352_vm0, %v788_v49, %v803_v51 }
 0x2ce   : > { %v793_v46 = vpop.permute.xlu0 %792  ;;  %1972 = vmatpush1.bf16.msk.msra.mxu1 %vm2331_vm9, %v1970_v42 }
 0x2cf   : > { %v795_v50 = vpop.permute.xlu1 %794  ;;  %v806_v53 = vsel %vm352_vm0, %v790_v44, %v802_v48  ;;  %v1914_v48 = vld [vmem:[%s2752_s3 + $0x8] sm:$0xf] }
 0x2d0   : > { %v797_v52 = vsel %vm563_vm14, %v795_v50, %v793_v46  ;;  %v796_v54 = vsel %vm563_vm14, %v793_v46, %v795_v50 }
 0x2d1   : > { %v799_v55 = vmul.f32 %v2402_v26, %v797_v52  ;;  %1903 = vmatmul.mubr.msk.f32.vlgmr.msra.gmra.mrb[2].mxu1 %vm469_vm10, %v576_v47  ;;  %v1982_v60 = vpack.c.bf16 %v796_v54, %v806_v53 }
 0x2d2   : > { %890 = vmatprep.mubr.f32.mxu1 %v2147_v0 }
 0x2d3   : > { %v1979_v59 = vpack.c.bf16 %v799_v55, %v807_v56  ;;  %v1126_v8 = vpop.permute.xlu1 %1125 }
 0x2d5   : > { %1981 = vmatprep.subr.msk.bf16.mxu1 %vm2331_vm9, %v1979_v59 }
 0x2d6   : > { %1984 = vmatpush1.bf16.msk.msra.mxu1 %vm2331_vm9, %v1982_v60 }
 0x2d9   : > { %1913 = vmatmul.mubr.msk.f32.vlgmr.msra.gmra.mrb[4].mxu1 %vm469_vm10, %v1909_v61 }
 0x2da   : > { %1116 = vmatprep.mubr.f32.mxu1 %v2147_v0 }
 0x2df   : > { %v815_v1 = vpop.permute.xlu0 %814 }
 0x2e3   : > { %v1128_v9 = vpop.permute.xlu0 %1127 }
 0x2e4   : > { %v1129_v15 = vsel %vm446_vm4, %v1126_v8, %v1128_v9  ;;  %v1130_v16 = vsel %vm446_vm4, %v1128_v9, %v1126_v8 }
 0x2e5   : > { %v1131_v32 = vmul.f32 %v2305_v29, %v1130_v16  ;;  %v1132_v24 = vmul.f32 %v2308_v30, %v1129_v15 }
 0x2e7   : > { %v1141_v46 = vsel %vm352_vm0, %v1131_v32, %v2276_v17  ;;  %v1142_v47 = vsel %vm352_vm0, %v1132_v24, %v2287_v20  ;;  %v1924_v17 = vld [vmem:[%s2752_s3 + $0xc] sm:$0xf] }
 0x3a4   : > { %v2443_v62 = vpop.f32.mrb[2].mxu1 }
 0x3a5   : > { %v2445_v63 = vpop.f32.mrb[3].mxu1 }
 0x3ac   : > { %v892_v2 = vpop.f32.mrb[4].mxu1 }
 0x3ad   : > { %v893_v3 = vadd.f32 %v892_v2, %v815_v1  ;;  %v894_v4 = vpop.f32.mrb[5].mxu1 }
 0x3ae   : > { %v895_v5 = vadd.f32 %v894_v4, %v815_v1  ;;  %v1930_v1 = vld [vmem:[%s2755_s6 + $0xc] sm:$0xf] }
 0x3af   : > { %897 = vrot.lane.b32.xlu1 %v893_v3, %s2150_s16  ;;  %v915_v21 = vrot.slane %v893_v3, 4 }
 0x3b0   : > { %899 = vrot.lane.b32.xlu0 %v895_v5, %s2150_s16  ;;  %v916_v22 = vrot.slane %v895_v5, 4 }
 0x3b3   : > { %905 = vrot.lane.b32.xlu1 %v893_v3, %s2149_s15 }
 0x3b4   : > { %907 = vrot.lane.b32.xlu0 %v895_v5, %s2149_s15 }
 0x3b7   : > { %1133 = vrot.lane.b32.xlu1 %v2350_v57, %s2149_s15 }
 0x3b8   : > { %1135 = vrot.lane.b32.xlu0 %v2353_v58, %s2149_s15 }
 0x3bb   : > { %927 = vperm.xlu1 %2081, %v1915_v6  }
 0x3bc   : > { %1149 = vperm.xlu0 %2080, %v1925_v7  }
 0x421   : > { %v898_v10 = vpop.permute.xlu1 %897 }
 0x422   : > { %v900_v11 = vpop.permute.xlu0 %899 }
 0x423   : > { %v901_v57 = vsel %vm446_vm4, %v898_v10, %v900_v11  ;;  %v902_v58 = vsel %vm446_vm4, %v900_v11, %v898_v10 }
 0x424   : > { %v903_v12 = vmul.f32 %v2305_v29, %v902_v58  ;;  %v904_v13 = vmul.f32 %v2308_v30, %v901_v57 }
 0x425   : > { %v906_v14 = vpop.permute.xlu1 %905 }
 0x426   : > { %v908_v19 = vpop.permute.xlu0 %907  ;;  %v919_v33 = vsel %vm352_vm0, %v903_v12, %v915_v21  ;;  %v920_v34 = vsel %vm352_vm0, %v904_v13, %v916_v22 }
 0x427   : > { %v909_v25 = vsel %vm455_vm7, %v906_v14, %v908_v19  ;;  %v910_v27 = vsel %vm455_vm7, %v908_v19, %v906_v14 }
 0x428   : > { %v911_v28 = vmul.f32 %v2318_v36, %v909_v25  ;;  %v912_v31 = vmul.f32 %v2321_v37, %v910_v27  ;;  %v1919_v27 = vld [vmem:[%s2754_s5 + $0x8] sm:$0xf] }
 0x429   : > { %v1134_v35 = vpop.permute.xlu1 %1133 }
 0x42a   : > { %v1985_v38 = vpack.c.bf16 %v912_v31, %v920_v34  ;;  %v1988_v39 = vpack.c.bf16 %v911_v28, %v919_v33  ;;  %v1136_v40 = vpop.permute.xlu0 %1135 }
 0x42b   : > { %v1137_v41 = vsel %vm455_vm7, %v1134_v35, %v1136_v40  ;;  %v1138_v42 = vsel %vm455_vm7, %v1136_v40, %v1134_v35 }
 0x42c   : > { %v1139_v43 = vmul.f32 %v2318_v36, %v1137_v41  ;;  %v1140_v44 = vmul.f32 %v2321_v37, %v1138_v42  ;;  %1987 = vmatprep.subr.msk.bf16.mxu0 %vm2331_vm9, %v1985_v38  ;;  %v1929_v42 = vld [vmem:[%s2754_s5 + $0xc] sm:$0xf] }
 0x42d   : > { %1990 = vmatpush1.bf16.msk.msra.mxu0 %vm2331_vm9, %v1988_v39 }
 0x42e   : > { %v1997_v49 = vpack.c.bf16 %v1140_v44, %v1142_v47  ;;  %v2000_v50 = vpack.c.bf16 %v1139_v43, %v1141_v46 }
 0x430   : > { %1918 = vmatmul.mubr.msk.f32.vlgmr.msra.gmra.mrb[6].mxu0 %vm469_vm10, %v1914_v48  ;;  %1999 = vmatprep.subr.msk.bf16.mxu0 %vm2331_vm9, %v1997_v49 }
 0x431   : > { %2002 = vmatpush1.bf16.msk.msra.mxu0 %vm2331_vm9, %v2000_v50  ;;  %1225 = vmatprep.mubr.f32.mxu0 %v2147_v0 }
 0x434   : > { %1928 = vmatmul.mubr.msk.f32.vlgmr.msra.gmra.mrb[8].mxu0 %vm469_vm10, %v1924_v17  ;;  %v1935_v17 = vld [vmem:[%s2753_s4 + $0x10] sm:$0xf] }
 0x435   : > { %1451 = vmatprep.mubr.f32.mxu0 %v2147_v0 }
 0x43a   : > { %v928_v20 = vpop.permute.xlu1 %927 }
 0x43b   : > { %v1150_v59 = vpop.permute.xlu0 %1149 }
 0x503   : > { %v1005_v51 = vpop.f32.mrb[6].mxu0 }
 0x504   : > { %v1006_v52 = vadd.f32 %v1005_v51, %v928_v20  ;;  %v1007_v53 = vpop.f32.mrb[7].mxu0 }
 0x505   : > { %v1008_v54 = vadd.f32 %v1007_v53, %v928_v20 }
 0x506   : > { %1010 = vrot.lane.b32.xlu1 %v1006_v52, %s2152_s8  ;;  %v1028_v7 = vrot.slane %v1006_v52, 4 }
 0x507   : > { %v1227_v55 = vpop.f32.mrb[8].mxu0  ;;  %1012 = vrot.lane.b32.xlu0 %v1008_v54, %s2152_s8  ;;  %v1029_v10 = vrot.slane %v1008_v54, 4 }
 0x508   : > { %v1229_v56 = vpop.f32.mrb[9].mxu0  ;;  %v1228_v60 = vadd.f32 %v1227_v55, %v1150_v59 }
 0x509   : > { %v1230_v61 = vadd.f32 %v1229_v56, %v1150_v59 }
 0x50a   : > { %1018 = vrot.lane.b32.xlu1 %v1006_v52, %s2153_s13  ;;  %v1250_v28 = vrot.slane %v1228_v60, 4 }
 0x50b   : > { %1020 = vrot.lane.b32.xlu0 %v1008_v54, %s2153_s13  ;;  %v1251_v24 = vrot.slane %v1230_v61, 4 }
 0x50e   : > { %1232 = vrot.lane.b32.xlu1 %v1228_v60, %s2152_s8 }
 0x50f   : > { %1234 = vrot.lane.b32.xlu0 %v1230_v61, %s2152_s8 }
 0x512   : > { %1240 = vrot.lane.b32.xlu1 %v1228_v60, %s2153_s13 }
 0x513   : > { %1242 = vrot.lane.b32.xlu0 %v1230_v61, %s2153_s13 }
 0x516   : > { %1262 = vperm.xlu1 %2081, %v1930_v1  }
 0x578   : > { %v1011_v2 = vpop.permute.xlu1 %1010 }
 0x579   : > { %v1013_v3 = vpop.permute.xlu0 %1012 }
 0x57a   : > { %v1015_v4 = vsel %vm554_vm12, %v1013_v3, %v1011_v2  ;;  %v1014_v8 = vsel %vm554_vm12, %v1011_v2, %v1013_v3 }
 0x57b   : > { %v1016_v5 = vmul.f32 %v2394_v18, %v1015_v4  ;;  %v1033_v13 = vsel %vm352_vm0, %v1014_v8, %v1029_v10 }
 0x57c   : > { %v1019_v6 = vpop.permute.xlu1 %1018 }
 0x57d   : > { %v1021_v9 = vpop.permute.xlu0 %1020  ;;  %v1032_v12 = vsel %vm352_vm0, %v1016_v5, %v1028_v7 }
 0x57e   : > { %v1023_v11 = vsel %vm563_vm14, %v1021_v9, %v1019_v6  ;;  %v1022_v57 = vsel %vm563_vm14, %v1019_v6, %v1021_v9  ;;  %v1934_v9 = vld [vmem:[%s2752_s3 + $0x10] sm:$0xf] }
 0x57f   : > { %v1025_v58 = vmul.f32 %v2402_v26, %v1023_v11  ;;  %v1994_v19 = vpack.c.bf16 %v1022_v57, %v1032_v12 }
 0x580   : > { %v1233_v14 = vpop.permute.xlu1 %1232 }
 0x581   : > { %v1991_v15 = vpack.c.bf16 %v1025_v58, %v1033_v13  ;;  %v1235_v16 = vpop.permute.xlu0 %1234  ;;  %v1940_v13 = vld [vmem:[%s2755_s6 + $0x10] sm:$0xf] }
 0x582   : > { %v1237_v21 = vsel %vm554_vm12, %v1235_v16, %v1233_v14  ;;  %v1236_v31 = vsel %vm554_vm12, %v1233_v14, %v1235_v16 }
 0x583   : > { %v1238_v22 = vmul.f32 %v2394_v18, %v1237_v21  ;;  %1993 = vmatprep.subr.msk.bf16.mxu1 %vm2331_vm9, %v1991_v15  ;;  %v1255_v39 = vsel %vm352_vm0, %v1236_v31, %v1251_v24 }
 0x584   : > { %v1241_v25 = vpop.permute.xlu1 %1240  ;;  %1996 = vmatpush1.bf16.msk.msra.mxu1 %vm2331_vm9, %v1994_v19 }
 0x585   : > { %v1243_v32 = vpop.permute.xlu0 %1242  ;;  %v1254_v38 = vsel %vm352_vm0, %v1238_v22, %v1250_v28 }
 0x586   : > { %v1245_v33 = vsel %vm563_vm14, %v1243_v32, %v1241_v25  ;;  %v1244_v34 = vsel %vm563_vm14, %v1241_v25, %v1243_v32 }
 0x587   : > { %v1247_v35 = vmul.f32 %v2402_v26, %v1245_v33  ;;  %1923 = vmatmul.mubr.msk.f32.vlgmr.msra.gmra.mrb[6].mxu1 %vm469_vm10, %v1919_v27  ;;  %v2006_v41 = vpack.c.bf16 %v1244_v34, %v1254_v38 }
 0x588   : > { %1338 = vmatprep.mubr.f32.mxu1 %v2147_v0 }
 0x589   : > { %v2003_v40 = vpack.c.bf16 %v1247_v35, %v1255_v39  ;;  %v1939_v39 = vld [vmem:[%s2754_s5 + $0x10] sm:$0xf] }
 0x58b   : > { %2005 = vmatprep.subr.msk.bf16.mxu1 %vm2331_vm9, %v2003_v40 }
 0x58c   : > { %2008 = vmatpush1.bf16.msk.msra.mxu1 %vm2331_vm9, %v2006_v41 }
 0x58f   : > { %1933 = vmatmul.mubr.msk.f32.vlgmr.msra.gmra.mrb[8].mxu1 %vm469_vm10, %v1929_v42 }
 0x590   : > { %1564 = vmatprep.mubr.f32.mxu1 %v2147_v0 }
 0x595   : > { %v1263_v46 = vpop.permute.xlu1 %1262 }
 0x65a   : > { %v2562_v43 = vpop.f32.mrb[6].mxu1 }
 0x65b   : > { %v2564_v44 = vpop.f32.mrb[7].mxu1 }
 0x662   : > { %v1340_v47 = vpop.f32.mrb[8].mxu1 }
 0x663   : > { %v1341_v48 = vadd.f32 %v1340_v47, %v1263_v46  ;;  %v1342_v49 = vpop.f32.mrb[9].mxu1 }
 0x664   : > { %v1343_v50 = vadd.f32 %v1342_v49, %v1263_v46 }
 0x665   : > { %1345 = vrot.lane.b32.xlu0 %v1341_v48, %s2150_s16  ;;  %v1363_v60 = vrot.slane %v1341_v48, 4 }
 0x666   : > { %1347 = vrot.lane.b32.xlu1 %v1343_v50, %s2150_s16  ;;  %v1364_v61 = vrot.slane %v1343_v50, 4 }
 0x669   : > { %1353 = vrot.lane.b32.xlu0 %v1341_v48, %s2149_s15  ;;  %v1945_v48 = vld [vmem:[%s2753_s4 + $0x14] sm:$0xf] }
 0x66a   : > { %1355 = vrot.lane.b32.xlu1 %v1343_v50, %s2149_s15 }
 0x66d   : > { %1375 = vperm.xlu0 %2080, %v1935_v17  }
 0x6d7   : > { %v1346_v20 = vpop.permute.xlu0 %1345 }
 0x6d8   : > { %v1348_v51 = vpop.permute.xlu1 %1347 }
 0x6d9   : > { %v1349_v52 = vsel %vm446_vm4, %v1346_v20, %v1348_v51  ;;  %v1350_v53 = vsel %vm446_vm4, %v1348_v51, %v1346_v20 }
 0x6da   : > { %v1351_v54 = vmul.f32 %v2305_v29, %v1350_v53  ;;  %v1352_v55 = vmul.f32 %v2308_v30, %v1349_v52 }
 0x6db   : > { %v1354_v56 = vpop.permute.xlu0 %1353 }
 0x6dc   : > { %v1356_v59 = vpop.permute.xlu1 %1355  ;;  %v1367_v5 = vsel %vm352_vm0, %v1351_v54, %v1363_v60  ;;  %v1368_v6 = vsel %vm352_vm0, %v1352_v55, %v1364_v61 }
 0x6dd   : > { %v1357_v1 = vsel %vm455_vm7, %v1354_v56, %v1356_v59  ;;  %v1358_v2 = vsel %vm455_vm7, %v1356_v59, %v1354_v56 }
 0x6de   : > { %v1359_v3 = vmul.f32 %v2318_v36, %v1357_v1  ;;  %v1360_v4 = vmul.f32 %v2321_v37, %v1358_v2 }
 0x6e0   : > { %v2009_v7 = vpack.c.bf16 %v1360_v4, %v1368_v6  ;;  %v2012_v8 = vpack.c.bf16 %v1359_v3, %v1367_v5  ;;  %v1944_v3 = vld [vmem:[%s2752_s3 + $0x14] sm:$0xf] }
 0x6e2   : > { %2011 = vmatprep.subr.msk.bf16.mxu0 %vm2331_vm9, %v2009_v7  ;;  %v577_v7 = vld [vmem:[%s2755_s6] sm:$0xf] }
 0x6e3   : > { %2014 = vmatpush1.bf16.msk.msra.mxu0 %vm2331_vm9, %v2012_v8  ;;  %v1950_v8 = vld [vmem:[%s2755_s6 + $0x14] sm:$0xf] }
 0x6e6   : > { %1938 = vmatmul.mubr.msk.f32.vlgmr.msra.gmra.mrb[10].mxu0 %vm469_vm10, %v1934_v9  ;;  %v1920_v9 = vld [vmem:[%s2755_s6 + $0x8] sm:$0xf] }
 0x6e7   : > { %1677 = vmatprep.mubr.f32.mxu0 %v2147_v0 }
 0x6ec   : > { %v1376_v10 = vpop.permute.xlu0 %1375 }
 0x7b9   : > { %v1453_v11 = vpop.f32.mrb[10].mxu0 }
 0x7ba   : > { %v1454_v57 = vadd.f32 %v1453_v11, %v1376_v10  ;;  %v1455_v58 = vpop.f32.mrb[11].mxu0 }
 0x7bb   : > { %v1456_v12 = vadd.f32 %v1455_v58, %v1376_v10 }
 0x7bc   : > { %1458 = vrot.lane.b32.xlu1 %v1454_v57, %s2152_s8  ;;  %v1476_v22 = vrot.slane %v1454_v57, 4 }
 0x7bd   : > { %1460 = vrot.lane.b32.xlu0 %v1456_v12, %s2152_s8  ;;  %v1477_v28 = vrot.slane %v1456_v12, 4 }
 0x7c0   : > { %1466 = vrot.lane.b32.xlu1 %v1454_v57, %s2153_s13 }
 0x7c1   : > { %1468 = vrot.lane.b32.xlu0 %v1456_v12, %s2153_s13 }
 0x7c4   : > { %1488 = vperm.xlu1 %2081, %v1940_v13  }
 0x82e   : > { %v1459_v14 = vpop.permute.xlu1 %1458 }
 0x82f   : > { %v1461_v15 = vpop.permute.xlu0 %1460 }
 0x830   : > { %v1463_v16 = vsel %vm554_vm12, %v1461_v15, %v1459_v14  ;;  %v1462_v25 = vsel %vm554_vm12, %v1459_v14, %v1461_v15 }
 0x831   : > { %v1464_v19 = vmul.f32 %v2394_v18, %v1463_v16  ;;  %v1481_v34 = vsel %vm352_vm0, %v1462_v25, %v1477_v28 }
 0x832   : > { %v1467_v21 = vpop.permute.xlu1 %1466 }
 0x833   : > { %v1469_v27 = vpop.permute.xlu0 %1468  ;;  %v1480_v33 = vsel %vm352_vm0, %v1464_v19, %v1476_v22 }
 0x834   : > { %v1471_v31 = vsel %vm563_vm14, %v1469_v27, %v1467_v21  ;;  %v1470_v32 = vsel %vm563_vm14, %v1467_v21, %v1469_v27 }
 0x835   : > { %v1473_v24 = vmul.f32 %v2402_v26, %v1471_v31  ;;  %v2018_v38 = vpack.c.bf16 %v1470_v32, %v1480_v33 }
 0x837   : > { %v2015_v35 = vpack.c.bf16 %v1473_v24, %v1481_v34 }
 0x839   : > { %2017 = vmatprep.subr.msk.bf16.mxu1 %vm2331_vm9, %v2015_v35 }
 0x83a   : > { %2020 = vmatpush1.bf16.msk.msra.mxu1 %vm2331_vm9, %v2018_v38 }
 0x83d   : > { %1943 = vmatmul.mubr.msk.f32.vlgmr.msra.gmra.mrb[10].mxu1 %vm469_vm10, %v1939_v39 }
 0x83e   : > { %1790 = vmatprep.mubr.f32.mxu1 %v2147_v0 }
 0x843   : > { %v1489_v40 = vpop.permute.xlu1 %1488 }
 0x910   : > { %v1566_v41 = vpop.f32.mrb[10].mxu1 }
 0x911   : > { %v1567_v42 = vadd.f32 %v1566_v41, %v1489_v40  ;;  %v1568_v46 = vpop.f32.mrb[11].mxu1 }
 0x912   : > { %v1569_v47 = vadd.f32 %v1568_v46, %v1489_v40 }
 0x913   : > { %1571 = vrot.lane.b32.xlu0 %v1567_v42, %s2150_s16  ;;  %v1589_v54 = vrot.slane %v1567_v42, 4 }
 0x914   : > { %1573 = vrot.lane.b32.xlu1 %v1569_v47, %s2150_s16  ;;  %v1590_v55 = vrot.slane %v1569_v47, 4 }
 0x917   : > { %1579 = vrot.lane.b32.xlu0 %v1567_v42, %s2149_s15 }
 0x918   : > { %1581 = vrot.lane.b32.xlu1 %v1569_v47, %s2149_s15  ;;  %s1819_s15 = sshll.u32 %s2270_s14, 4  ;;  %s2701_s15 = int_to_ptr.vmem [resolvable:$true] %s1819_s15 }
 0x919   : > { %s2083_s17 = scalar_lea.vmem %s2701_s15, 512  ;;  %p2090_p0 = scmp.lt.s32.totalorder %s2701_s15, %s2088_s19 }
 0x91a   : > { %p2084_p11 = scmp.ne.s32.totalorder %s2701_s15, %s2083_s17  ;;  %p2091_p1 = scmp.lt.s32.totalorder %s2089_s20, %s2083_s17 }
 0x91b   : > { %1601 = vperm.xlu0 %2080, %v1945_v48  }
 0x91c   : > { %p2085_p12 = pnand %p2084_p11, %p2234_p5  ;;  %p2092_p2 = por %p2091_p1, %p2090_p0 }
 0x91e   : > { %p2086_p13 = pneg %p2085_p12 }
 0x920   : > { %p2093_p3 = pnand %p2092_p2, %p2086_p13 }
 0x985   : > { %v1572_v49 = vpop.permute.xlu0 %1571 }
 0x986   : > { %v1574_v0 = vpop.permute.xlu1 %1573 }
 0x987   : > { %v1575_v50 = vsel %vm446_vm4, %v1572_v49, %v1574_v0  ;;  %v1576_v17 = vsel %vm446_vm4, %v1574_v0, %v1572_v49 }
 0x988   : > { %v1577_v20 = vmul.f32 %v2305_v29, %v1576_v17  ;;  %v1578_v51 = vmul.f32 %v2308_v30, %v1575_v50 }
 0x989   : > { %v1580_v52 = vpop.permute.xlu0 %1579 }
 0x98a   : > { %v1582_v53 = vpop.permute.xlu1 %1581  ;;  %v1593_v1 = vsel %vm352_vm0, %v1577_v20, %v1589_v54  ;;  %v1594_v29 = vsel %vm352_vm0, %v1578_v51, %v1590_v55 }
 0x98b   : > { %v1583_v56 = vsel %vm455_vm7, %v1580_v52, %v1582_v53  ;;  %v1584_v59 = vsel %vm455_vm7, %v1582_v53, %v1580_v52 }
 0x98c   : > { %v1585_v60 = vmul.f32 %v2318_v36, %v1583_v56  ;;  %v1586_v61 = vmul.f32 %v2321_v37, %v1584_v59 }
 0x98e   : > { %v2021_v2 = vpack.c.bf16 %v1586_v61, %v1594_v29  ;;  %v2024_v30 = vpack.c.bf16 %v1585_v60, %v1593_v1 }
 0x990   : > { %2023 = vmatprep.subr.msk.bf16.mxu0 %vm2331_vm9, %v2021_v2 }
 0x991   : > { %2026 = vmatpush1.bf16.msk.msra.mxu0 %vm2331_vm9, %v2024_v30 }
 0x994   : > { %1948 = vmatmul.mubr.msk.f32.vlgmr.msra.gmra.mrb[12].mxu0 %vm469_vm10, %v1944_v3 }
 0x99a   : > { %v1602_v36 = vpop.permute.xlu0 %1601 }
 0xa67   : > { %v1679_v37 = vpop.f32.mrb[12].mxu0 }
 0xa68   : > { %v1680_v4 = vadd.f32 %v1679_v37, %v1602_v36  ;;  %v1681_v5 = vpop.f32.mrb[13].mxu0 }
 0xa69   : > { %v1682_v6 = vadd.f32 %v1681_v5, %v1602_v36 }
 0xa6a   : > { %1684 = vrot.lane.b32.xlu1 %v1680_v4, %s2152_s8  ;;  %v1702_v13 = vrot.slane %v1680_v4, 4 }
 0xa6b   : > { %1686 = vrot.lane.b32.xlu0 %v1682_v6, %s2152_s8  ;;  %v1703_v16 = vrot.slane %v1682_v6, 4 }
 0xa6e   : > { %1692 = vrot.lane.b32.xlu1 %v1680_v4, %s2153_s13 }
 0xa6f   : > { %1694 = vrot.lane.b32.xlu0 %v1682_v6, %s2153_s13 }
 0xa72   : > { %580 = vperm.xlu1 %2081, %v577_v7  }
 0xa73   : > { %1714 = vperm.xlu0 %2080, %v1950_v8  }
 0xa76   : > { %1040 = vperm.xlu1 %2081, %v1920_v9  }
 0xadc   : > { %v1685_v10 = vpop.permute.xlu1 %1684 }
 0xadd   : > { %v1687_v11 = vpop.permute.xlu0 %1686 }
 0xade   : > { %v1689_v57 = vsel %vm554_vm12, %v1687_v11, %v1685_v10  ;;  %v1688_v14 = vsel %vm554_vm12, %v1685_v10, %v1687_v11 }
 0xadf   : > { %v1690_v58 = vmul.f32 %v2394_v18, %v1689_v57  ;;  %v1707_v18 = vsel %vm352_vm0, %v1688_v14, %v1703_v16 }
 0xae0   : > { %v1693_v12 = vpop.permute.xlu1 %1692 }
 0xae1   : > { %v1695_v15 = vpop.permute.xlu0 %1694  ;;  %v1706_v25 = vsel %vm352_vm0, %v1690_v58, %v1702_v13 }
 0xae2   : > { %v1697_v19 = vsel %vm563_vm14, %v1695_v15, %v1693_v12  ;;  %v1696_v21 = vsel %vm563_vm14, %v1693_v12, %v1695_v15 }
 0xae3   : > { %v1699_v22 = vmul.f32 %v2402_v26, %v1697_v19  ;;  %v2030_v28 = vpack.c.bf16 %v1696_v21, %v1706_v25 }
 0xae5   : > { %v2027_v27 = vpack.c.bf16 %v1699_v22, %v1707_v18 }
 0xae7   : > { %2029 = vmatprep.subr.msk.bf16.mxu1 %vm2331_vm9, %v2027_v27 }
 0xae8   : > { %2032 = vmatpush1.bf16.msk.msra.mxu1 %vm2331_vm9, %v2030_v28 }
 0xaeb   : > { %1953 = vmatmul.mubr.msk.f32.vlgmr.msra.gmra.mrb[12].mxu1 %vm469_vm10, %v1949_v23 }
 0xaf1   : > { %v581_v26 = vpop.permute.xlu1 %580 }
 0xaf2   : > { %v659_v31 = vadd.f32 %v2443_v62, %v581_v26  ;;  %v661_v32 = vadd.f32 %v2445_v63, %v581_v26  ;;  %v1715_v38 = vpop.permute.xlu0 %1714 }
 0xaf4   : > { %v665_v24 = vrot.slane %v659_v31, 4  ;;  %v666_v33 = vrot.slane %v661_v32, 4 }
 0xaf5   : > { %v1041_v34 = vpop.permute.xlu1 %1040 }
 0xaf6   : > { %669 = vst [vmem:[%s2270_s14] sm:$0xf0] %v665_v24  ;;  %670 = vst [vmem:[%s2270_s14 + $0x8] sm:$0xf0] %v666_v33  ;;  %v1119_v45 = vadd.f32 %v2562_v43, %v1041_v34  ;;  %v1121_v35 = vadd.f32 %v2564_v44, %v1041_v34 }
 0xaf8   : > { %1123 = vst [vmem:[%s2270_s14 + $0x10] sm:$0xf] %v1119_v45  ;;  %1124 = vst [vmem:[%s2270_s14 + $0x18] sm:$0xf] %v1121_v35 }
 0xbbe   : > { %v1792_v62 = vpop.f32.mrb[12].mxu1 }
 0xbbf   : > { %v1793_v39 = vadd.f32 %v1792_v62, %v1715_v38  ;;  %v1794_v63 = vpop.f32.mrb[13].mxu1 }
 0xbc0   : > { %v1795_v40 = vadd.f32 %v1794_v63, %v1715_v38 }
 0xbc1   : > { %v1799_v41 = vrot.slane %v1793_v39, 4 }
 0xbc2   : > { %v1800_v43 = vrot.slane %v1795_v40, 4 }
 0xbc3   : > { %1803 = vst [vmem:[%s2270_s14 + $0x10] sm:$0xf0] %v1799_v41 }
 0xbc4   : > { %1804 = vst [vmem:[%s2270_s14 + $0x18] sm:$0xf0] %v1800_v43 }
 0xbc5   : > { %2096 = shalt.err (!%p2093_p3)
}
 0xbc6   : > { %s2097_s9 = scalar_lea.hbm %s2699_s29, 512  ;;  %s2101_s21 = scalar_lea.hbm %s2756_s7, 1024 }
 0xbc7   : > { %p2098_p4 = scmp.ne.s32.totalorder %s2699_s29, %s2097_s9  ;;  %p2102_p9 = scmp.lt.u32.totalorder %s2699_s29, %s2756_s7 }
 0xbc8   : > { %p2103_p10 = scmp.lt.u32.totalorder %s2101_s21, %s2097_s9  ;;  %p2105_p12 = scmp.lt.u32.totalorder %s2097_s9, %s2699_s29 }
 0xbc9   : > { %p2099_p7 = pnand %p2098_p4, %p2234_p5 }
 0xbca   : > { %p2104_p11 = por %p2103_p10, %p2102_p9 }
 0xbcb   : > { %p2100_p8 = pneg %p2099_p7 }
 0xbcc   : > { %p2106_p13 = por %p2105_p12, %p2104_p11 }
 0xbce   : > { %p2107_p0 = pnand %p2106_p13, %p2100_p8 }
 0xbd0   : > { %2110 = shalt.err (!%p2107_p0)
}
 0xbd1   : > { %s2155_s23 = smov 256  }
 0xbd2   : > { %2033 = dma.vmem_to_hbm [thread:$0]  (%p2234_p5), %s2701_s15, 512, %s2699_s29, %s2707_s28, %s2155_s23, %s2155_s23, %s2152_s8  }
 0xbd3 PF: > { %p2039_p1 = scmp.ge.s32.totalorder %s2145_s27, 2  ;;  %s1834_s17 = sand.u32 1, %s2133_s24  }
 0xbd4   : > { %s1835_s18 = scalar_lea.sflag [#allocation3], %s1834_s17 }
 0xbd5   : > { %p2036_p2 = pnand %p2039_p1, %p2238_p6 }
 0xbd7   : > { %2128 = dma.done.wait (!%p2036_p2), %s1835_s18, 512  }
 0xbd8   : > { %2130 = vsyncadd (!%p2036_p2), %s1835_s18, 4294966784  ;;  %p17_p3 = scmp.ge.s32.totalorder %s2221_s30, 4   ;;  %s2761_s24 = smov %s2137_s25 }
 0xbd9   : > { %s2762_s25 = smov %s2141_s26  ;;  %s2763_s26 = smov %s2232_s10 }
 0xbda   : > { %s2764_s27 = smov %s2221_s30  ;;  %19 = sbr.rel (!%p17_p3) target bundleno = 3 (0x3), region = 103 }
 0xbe1   :  { %1840 = vsyncpa [#allocation3], 1 }
 0xbe2   :  { %1842 = vsyncpa [#allocation3 + $0x1], 1 }

</bundles_post_ra>
